<compile_context>
chip_gen: v7x
topology: tpu7x:2x2x1
jax: 0.10.0
libtpu: 0.0.40
codegen_flags: <defaults>
</compile_context>

<pallas_src>
import math
from functools import partial

import jax
import jax.numpy as jnp
from jax import lax
from jax.experimental import pallas as pl
from jax.experimental.pallas import tpu as pltpu


def _layer_norm(x, gamma, beta, eps=1e-5):
    mu = jnp.mean(x, axis=-1, keepdims=True)
    var = jnp.mean((x - mu) ** 2, axis=-1, keepdims=True)
    return (x - mu) * lax.rsqrt(var + eps) * gamma + beta


def encoder_layer_kernel(x_ref, mask_ref, wqkv_ref, bqkv_ref, wo_ref, bo_ref,
                         g1_ref, be1_ref, w1_ref, bf1_ref, w2_ref, bf2_ref,
                         g2_ref, be2_ref, o_ref, *, nhead):
    M, E = x_ref.shape                         # M = S * N fused token rows
    H = nhead

    xf = x_ref[...].astype(jnp.float32)        # (M, E) f32 for LN / residuals
    xb = xf.astype(jnp.bfloat16)               # bf16 operand for the MXU
    neg_mask = mask_ref[...]                   # (M, M): 0 same-batch, -1e30 otherwise

    # --- multi-head self-attention (softmax scale pre-folded into wq/bq) -----
    attn = jnp.zeros((M, E), jnp.float32)
    for h in range(H):                         # static unroll, H is small
        qh = jnp.dot(xb, wqkv_ref[h],         preferred_element_type=jnp.float32) + bqkv_ref[h]
        kh = jnp.dot(xb, wqkv_ref[H + h],     preferred_element_type=jnp.float32) + bqkv_ref[H + h]
        vh = jnp.dot(xb, wqkv_ref[2 * H + h], preferred_element_type=jnp.float32) + bqkv_ref[2 * H + h]

        # q @ k^T without materializing a transpose
        s = lax.dot_general(qh.astype(jnp.bfloat16), kh.astype(jnp.bfloat16),
                            (((1,), (1,)), ((), ())),
                            preferred_element_type=jnp.float32)          # (M, M)
        s = s + neg_mask                        # block-diagonal (same-batch) mask
        s = s - jnp.max(s, axis=-1, keepdims=True)
        p = jnp.exp(s)
        inv = pl.reciprocal(jnp.sum(p, axis=-1, keepdims=True), approx=True)
        p = (p * inv).astype(jnp.bfloat16)

        oh = jnp.dot(p, vh.astype(jnp.bfloat16),
                     preferred_element_type=jnp.float32)                 # (M, dh)
        # accumulate through this head's slice of the output projection:
        # avoids concatenating dh=8-wide pieces along the lane axis.
        attn = attn + jnp.dot(oh.astype(jnp.bfloat16), wo_ref[h],
                              preferred_element_type=jnp.float32)        # (M, E)
    attn = attn + bo_ref[...]

    # dropout layers are identity here (eval-mode forward semantics)
    x1 = _layer_norm(xf + attn, g1_ref[...], be1_ref[...])

    # --- feed-forward ---------------------------------------------------------
    h1 = jnp.maximum(
        jnp.dot(x1.astype(jnp.bfloat16), w1_ref[...],
                preferred_element_type=jnp.float32) + bf1_ref[...], 0.0)
    h2 = jnp.dot(h1.astype(jnp.bfloat16), w2_ref[...],
                 preferred_element_type=jnp.float32) + bf2_ref[...]
    x2 = _layer_norm(x1 + h2, g2_ref[...], be2_ref[...])

    # Output kept at E lanes (E=32 -> masked stores); a lane-dense repack would
    # need an in-kernel relayout that costs more than the store at this size.
    o_ref[...] = x2.astype(o_ref.dtype)


def init_params(key, d_model, dim_feedforward):
    """f32 parameters in 'math' layout (y = x @ W + b), mirroring TransformerEncoderLayer."""
    E, F = d_model, dim_feedforward
    ks = jax.random.split(key, 6)
    s = 0.02
    return dict(
        wq=jax.random.normal(ks[0], (E, E), jnp.float32) * s, bq=jnp.zeros((E,), jnp.float32),
        wk=jax.random.normal(ks[1], (E, E), jnp.float32) * s, bk=jnp.zeros((E,), jnp.float32),
        wv=jax.random.normal(ks[2], (E, E), jnp.float32) * s, bv=jnp.zeros((E,), jnp.float32),
        wo=jax.random.normal(ks[3], (E, E), jnp.float32) * s, bo=jnp.zeros((E,), jnp.float32),
        ln1_g=jnp.ones((E,), jnp.float32), ln1_b=jnp.zeros((E,), jnp.float32),
        w1=jax.random.normal(ks[4], (E, F), jnp.float32) * s, b1=jnp.zeros((F,), jnp.float32),
        w2=jax.random.normal(ks[5], (F, E), jnp.float32) * s, b2=jnp.zeros((E,), jnp.float32),
        ln2_g=jnp.ones((E,), jnp.float32), ln2_b=jnp.zeros((E,), jnp.float32),
    )


def prepare_params(params, nhead):
    """One-time weight prep (outside the hot path): head-major Q/K/V and out-proj
    slices, softmax scale folded into wq/bq, matmul weights cast to bf16."""
    E, F = params["w1"].shape
    assert E % nhead == 0, "d_model must be divisible by nhead"
    H, dh = nhead, E // nhead
    scale = 1.0 / math.sqrt(dh)

    def head_major(w):                       # (E, H*dh) -> (H, E, dh)
        return jnp.transpose(w.reshape(E, H, dh), (1, 0, 2))

    w_qkv = jnp.concatenate([head_major(params["wq"] * scale),
                             head_major(params["wk"]),
                             head_major(params["wv"])], axis=0).astype(jnp.bfloat16)  # (3H, E, dh)
    b_qkv = jnp.concatenate([(params["bq"] * scale).reshape(H, 1, dh),
                             params["bk"].reshape(H, 1, dh),
                             params["bv"].reshape(H, 1, dh)], axis=0).astype(jnp.float32)  # (3H, 1, dh)
    wo_h = params["wo"].reshape(H, dh, E).astype(jnp.bfloat16)                        # (H, dh, E)

    row = lambda v: v.reshape(1, -1).astype(jnp.float32)
    return (w_qkv, b_qkv, wo_h, row(params["bo"]),
            row(params["ln1_g"]), row(params["ln1_b"]),
            params["w1"].astype(jnp.bfloat16), row(params["b1"]),
            params["w2"].astype(jnp.bfloat16), row(params["b2"]),
            row(params["ln2_g"]), row(params["ln2_b"]))


@partial(jax.jit, static_argnames=("nhead",))
def cross_modal_attention(vis_feats, lang_feats, kernel_params, nhead):
    """vis_feats: (Sv, N, E), lang_feats: (Sl, N, E)  ->  (Sv+Sl, N, E)."""
    x = jnp.concatenate([vis_feats, lang_feats], axis=0)      # (S, N, E), torch.cat dim=0
    S, N, E = x.shape
    assert E % nhead == 0
    M = S * N
    x2d = x.reshape(M, E)                                     # free bitcast: row = s*N + b

    # block-diagonal additive mask (constant-folded under jit; keeps integer
    # modulo / iota arithmetic out of the kernel).
    bid = jnp.tile(jnp.arange(N, dtype=jnp.int32), S)          # batch id of fused row
    neg_mask = jnp.where(bid[:, None] == bid[None, :], 0.0, -1e30).astype(jnp.float32)

    args = (x2d, neg_mask) + tuple(kernel_params)

    def full_spec(a):
        nd = a.ndim
        return pl.BlockSpec(a.shape, lambda i, _nd=nd: (0,) * _nd)

    grid_spec = pltpu.PrefetchScalarGridSpec(
        num_scalar_prefetch=0,
        # Single step: the whole (M, E) slab fits VMEM at these sizes, so all
        # matmuls are batch-fused and no per-grid-step pipeline overhead is paid.
        # For v7x-scale problems, split the batch into >=2 "parallel" chunks here.
        grid=(1,),
        in_specs=[full_spec(a) for a in args],
        out_specs=pl.BlockSpec((M, E), lambda i: (0, 0)),
        scratch_shapes=[],
    )

    out = pl.pallas_call(
        partial(encoder_layer_kernel, nhead=nhead),
        out_shape=jax.ShapeDtypeStruct((M, E), x.dtype),
        grid_spec=grid_spec,
        compiler_params=pltpu.CompilerParams(
            dimension_semantics=("arbitrary",)),
    )(*args)

    return out.reshape(S, N, E)                                # free bitcast back to (S, N, E)


if __name__ == "__main__":
    d_model, nhead, dim_feedforward = 32, 4, 64
    batch, seq_vis, seq_lang = 2, 8, 8

    key = jax.random.PRNGKey(0)
    k_vis, k_lang, k_par = jax.random.split(key, 3)
    vis_feats = jax.random.normal(k_vis, (seq_vis, batch, d_model), jnp.float32)
    lang_feats = jax.random.normal(k_lang, (seq_lang, batch, d_model), jnp.float32)

    params = init_params(k_par, d_model, dim_feedforward)
    kparams = prepare_params(params, nhead)      # one-time weight prep, outside the hot path

    out = cross_modal_attention(vis_feats, lang_feats, kparams, nhead=nhead)
    out = jax.block_until_ready(out)
    assert out.shape == (seq_vis + seq_lang, batch, d_model)
    assert bool(jnp.all(jnp.isfinite(out)))
    print("KERNEL_OK")
</pallas_src>

<mosaic_0001>
module attributes {stable_mosaic.version = 11 : i64} {
  func.func @encoder_layer_kernel(%arg0: i32, %arg1: memref<32x32xf32, #tpu.memory_space<vmem>>, %arg2: memref<32x32xf32, #tpu.memory_space<vmem>>, %arg3: memref<12x32x8xbf16, #tpu.memory_space<vmem>>, %arg4: memref<12x1x8xf32, #tpu.memory_space<vmem>>, %arg5: memref<4x8x32xbf16, #tpu.memory_space<vmem>>, %arg6: memref<1x32xf32, #tpu.memory_space<vmem>>, %arg7: memref<1x32xf32, #tpu.memory_space<vmem>>, %arg8: memref<1x32xf32, #tpu.memory_space<vmem>>, %arg9: memref<32x64xbf16, #tpu.memory_space<vmem>>, %arg10: memref<1x64xf32, #tpu.memory_space<vmem>>, %arg11: memref<64x32xbf16, #tpu.memory_space<vmem>>, %arg12: memref<1x32xf32, #tpu.memory_space<vmem>>, %arg13: memref<1x32xf32, #tpu.memory_space<vmem>>, %arg14: memref<1x32xf32, #tpu.memory_space<vmem>>, %arg15: memref<32x32xf32, #tpu.memory_space<vmem>>) attributes {dimension_semantics = [#tpu.dimension_semantics<arbitrary>], iteration_bounds = array<i64: 1>, scalar_prefetch = 0 : i64, scratch_operands = 0 : i64, tpu.core_type = #tpu.core_type<tc>, window_params = [{pipeline_mode = #tpu.pipeline_mode<synchronous>, transform_indices = @transform_0, window_bounds = array<i64: 32, 32>}, {pipeline_mode = #tpu.pipeline_mode<synchronous>, transform_indices = @transform_1, window_bounds = array<i64: 32, 32>}, {pipeline_mode = #tpu.pipeline_mode<synchronous>, transform_indices = @transform_2, window_bounds = array<i64: 12, 32, 8>}, {pipeline_mode = #tpu.pipeline_mode<synchronous>, transform_indices = @transform_3, window_bounds = array<i64: 12, 1, 8>}, {pipeline_mode = #tpu.pipeline_mode<synchronous>, transform_indices = @transform_4, window_bounds = array<i64: 4, 8, 32>}, {pipeline_mode = #tpu.pipeline_mode<synchronous>, transform_indices = @transform_5, window_bounds = array<i64: 1, 32>}, {pipeline_mode = #tpu.pipeline_mode<synchronous>, transform_indices = @transform_6, window_bounds = array<i64: 1, 32>}, {pipeline_mode = #tpu.pipeline_mode<synchronous>, transform_indices = @transform_7, window_bounds = array<i64: 1, 32>}, {pipeline_mode = #tpu.pipeline_mode<synchronous>, transform_indices = @transform_8, window_bounds = array<i64: 32, 64>}, {pipeline_mode = #tpu.pipeline_mode<synchronous>, transform_indices = @transform_9, window_bounds = array<i64: 1, 64>}, {pipeline_mode = #tpu.pipeline_mode<synchronous>, transform_indices = @transform_10, window_bounds = array<i64: 64, 32>}, {pipeline_mode = #tpu.pipeline_mode<synchronous>, transform_indices = @transform_11, window_bounds = array<i64: 1, 32>}, {pipeline_mode = #tpu.pipeline_mode<synchronous>, transform_indices = @transform_12, window_bounds = array<i64: 1, 32>}, {pipeline_mode = #tpu.pipeline_mode<synchronous>, transform_indices = @transform_13, window_bounds = array<i64: 1, 32>}, {pipeline_mode = #tpu.pipeline_mode<synchronous>, transform_indices = @transform_14, window_bounds = array<i64: 32, 32>}]} {
    %c0 = arith.constant 0 : index
    %c0_0 = arith.constant 0 : index
    %0 = vector.load %arg1[%c0, %c0_0] : memref<32x32xf32, #tpu.memory_space<vmem>>, vector<32x32xf32>
    %1 = arith.truncf %0 : vector<32x32xf32> to vector<32x32xbf16>
    %c0_1 = arith.constant 0 : index
    %c0_2 = arith.constant 0 : index
    %2 = vector.load %arg2[%c0_1, %c0_2] : memref<32x32xf32, #tpu.memory_space<vmem>>, vector<32x32xf32>
    %cst = arith.constant 0.000000e+00 : f32
    %3 = vector.broadcast %cst : f32 to vector<32x32xf32>
    %c0_3 = arith.constant 0 : index
    %c0_4 = arith.constant 0 : index
    %c0_5 = arith.constant 0 : index
    %4 = vector.load %arg3[%c0_3, %c0_4, %c0_5] : memref<12x32x8xbf16, #tpu.memory_space<vmem>>, vector<1x32x8xbf16>
    %5 = vector.shape_cast %4 : vector<1x32x8xbf16> to vector<32x8xbf16>
    %cst_6 = arith.constant dense<0.000000e+00> : vector<32x8xf32>
    %6 = tpu.matmul %1, %5, %cst_6 {dimension_numbers = #tpu.dot_dimension_numbers<[1], [0], [0], [1], [0, 0, 1, 1], [], []>} : vector<32x32xbf16>, vector<32x8xbf16>, vector<32x8xf32> -> vector<32x8xf32>
    %c0_7 = arith.constant 0 : index
    %c0_8 = arith.constant 0 : index
    %c0_9 = arith.constant 0 : index
    %7 = vector.load %arg4[%c0_7, %c0_8, %c0_9] : memref<12x1x8xf32, #tpu.memory_space<vmem>>, vector<1x1x8xf32>
    %8 = vector.shape_cast %7 : vector<1x1x8xf32> to vector<1x8xf32>
    %9 = vector.broadcast %8 : vector<1x8xf32> to vector<32x8xf32>
    %10 = arith.addf %6, %9 : vector<32x8xf32>
    %c4 = arith.constant 4 : index
    %c0_10 = arith.constant 0 : index
    %c0_11 = arith.constant 0 : index
    %11 = vector.load %arg3[%c4, %c0_10, %c0_11] : memref<12x32x8xbf16, #tpu.memory_space<vmem>>, vector<1x32x8xbf16>
    %12 = vector.shape_cast %11 : vector<1x32x8xbf16> to vector<32x8xbf16>
    %cst_12 = arith.constant dense<0.000000e+00> : vector<32x8xf32>
    %13 = tpu.matmul %1, %12, %cst_12 {dimension_numbers = #tpu.dot_dimension_numbers<[1], [0], [0], [1], [0, 0, 1, 1], [], []>} : vector<32x32xbf16>, vector<32x8xbf16>, vector<32x8xf32> -> vector<32x8xf32>
    %c4_13 = arith.constant 4 : index
    %c0_14 = arith.constant 0 : index
    %c0_15 = arith.constant 0 : index
    %14 = vector.load %arg4[%c4_13, %c0_14, %c0_15] : memref<12x1x8xf32, #tpu.memory_space<vmem>>, vector<1x1x8xf32>
    %15 = vector.shape_cast %14 : vector<1x1x8xf32> to vector<1x8xf32>
    %16 = vector.broadcast %15 : vector<1x8xf32> to vector<32x8xf32>
    %17 = arith.addf %13, %16 : vector<32x8xf32>
    %c8 = arith.constant 8 : index
    %c0_16 = arith.constant 0 : index
    %c0_17 = arith.constant 0 : index
    %18 = vector.load %arg3[%c8, %c0_16, %c0_17] : memref<12x32x8xbf16, #tpu.memory_space<vmem>>, vector<1x32x8xbf16>
    %19 = vector.shape_cast %18 : vector<1x32x8xbf16> to vector<32x8xbf16>
    %cst_18 = arith.constant dense<0.000000e+00> : vector<32x8xf32>
    %20 = tpu.matmul %1, %19, %cst_18 {dimension_numbers = #tpu.dot_dimension_numbers<[1], [0], [0], [1], [0, 0, 1, 1], [], []>} : vector<32x32xbf16>, vector<32x8xbf16>, vector<32x8xf32> -> vector<32x8xf32>
    %c8_19 = arith.constant 8 : index
    %c0_20 = arith.constant 0 : index
    %c0_21 = arith.constant 0 : index
    %21 = vector.load %arg4[%c8_19, %c0_20, %c0_21] : memref<12x1x8xf32, #tpu.memory_space<vmem>>, vector<1x1x8xf32>
    %22 = vector.shape_cast %21 : vector<1x1x8xf32> to vector<1x8xf32>
    %23 = vector.broadcast %22 : vector<1x8xf32> to vector<32x8xf32>
    %24 = arith.addf %20, %23 : vector<32x8xf32>
    %25 = arith.truncf %10 : vector<32x8xf32> to vector<32x8xbf16>
    %26 = arith.truncf %17 : vector<32x8xf32> to vector<32x8xbf16>
    %cst_22 = arith.constant dense<0.000000e+00> : vector<32x32xf32>
    %27 = tpu.matmul %25, %26, %cst_22 {dimension_numbers = #tpu.dot_dimension_numbers<[1], [1], [0], [0], [0, 0, 1, 0], [], []>} : vector<32x8xbf16>, vector<32x8xbf16>, vector<32x32xf32> -> vector<32x32xf32>
    %28 = arith.addf %27, %2 : vector<32x32xf32>
    %cst_23 = arith.constant dense<0xFF800000> : vector<32xf32>
    %29 = vector.multi_reduction <maximumf>, %28, %cst_23 [1] : vector<32x32xf32> to vector<32xf32>
    %30 = vector.shape_cast %29 : vector<32xf32> to vector<32x1xf32>
    %31 = vector.broadcast %30 : vector<32x1xf32> to vector<32x32xf32>
    %32 = arith.subf %28, %31 : vector<32x32xf32>
    %33 = math.exp %32 : vector<32x32xf32>
    %cst_24 = arith.constant dense<0.000000e+00> : vector<32xf32>
    %34 = vector.multi_reduction <add>, %33, %cst_24 [1] : vector<32x32xf32> to vector<32xf32>
    %35 = vector.shape_cast %34 : vector<32xf32> to vector<32x1xf32>
    %36 = tpu.reciprocal %35 {approx = true} : vector<32x1xf32> -> vector<32x1xf32>
    %37 = vector.broadcast %36 : vector<32x1xf32> to vector<32x32xf32>
    %38 = arith.mulf %33, %37 : vector<32x32xf32>
    %39 = arith.truncf %38 : vector<32x32xf32> to vector<32x32xbf16>
    %40 = arith.truncf %24 : vector<32x8xf32> to vector<32x8xbf16>
    %cst_25 = arith.constant dense<0.000000e+00> : vector<32x8xf32>
    %41 = tpu.matmul %39, %40, %cst_25 {dimension_numbers = #tpu.dot_dimension_numbers<[1], [0], [0], [1], [0, 0, 1, 1], [], []>} : vector<32x32xbf16>, vector<32x8xbf16>, vector<32x8xf32> -> vector<32x8xf32>
    %42 = arith.truncf %41 : vector<32x8xf32> to vector<32x8xbf16>
    %c0_26 = arith.constant 0 : index
    %c0_27 = arith.constant 0 : index
    %c0_28 = arith.constant 0 : index
    %43 = vector.load %arg5[%c0_26, %c0_27, %c0_28] : memref<4x8x32xbf16, #tpu.memory_space<vmem>>, vector<1x8x32xbf16>
    %44 = vector.shape_cast %43 : vector<1x8x32xbf16> to vector<8x32xbf16>
    %cst_29 = arith.constant dense<0.000000e+00> : vector<32x32xf32>
    %45 = tpu.matmul %42, %44, %cst_29 {dimension_numbers = #tpu.dot_dimension_numbers<[1], [0], [0], [1], [0, 0, 1, 1], [], []>} : vector<32x8xbf16>, vector<8x32xbf16>, vector<32x32xf32> -> vector<32x32xf32>
    %46 = arith.addf %3, %45 : vector<32x32xf32>
    %c1 = arith.constant 1 : index
    %c0_30 = arith.constant 0 : index
    %c0_31 = arith.constant 0 : index
    %47 = vector.load %arg3[%c1, %c0_30, %c0_31] : memref<12x32x8xbf16, #tpu.memory_space<vmem>>, vector<1x32x8xbf16>
    %48 = vector.shape_cast %47 : vector<1x32x8xbf16> to vector<32x8xbf16>
    %cst_32 = arith.constant dense<0.000000e+00> : vector<32x8xf32>
    %49 = tpu.matmul %1, %48, %cst_32 {dimension_numbers = #tpu.dot_dimension_numbers<[1], [0], [0], [1], [0, 0, 1, 1], [], []>} : vector<32x32xbf16>, vector<32x8xbf16>, vector<32x8xf32> -> vector<32x8xf32>
    %c1_33 = arith.constant 1 : index
    %c0_34 = arith.constant 0 : index
    %c0_35 = arith.constant 0 : index
    %50 = vector.load %arg4[%c1_33, %c0_34, %c0_35] : memref<12x1x8xf32, #tpu.memory_space<vmem>>, vector<1x1x8xf32>
    %51 = vector.shape_cast %50 : vector<1x1x8xf32> to vector<1x8xf32>
    %52 = vector.broadcast %51 : vector<1x8xf32> to vector<32x8xf32>
    %53 = arith.addf %49, %52 : vector<32x8xf32>
    %c5 = arith.constant 5 : index
    %c0_36 = arith.constant 0 : index
    %c0_37 = arith.constant 0 : index
    %54 = vector.load %arg3[%c5, %c0_36, %c0_37] : memref<12x32x8xbf16, #tpu.memory_space<vmem>>, vector<1x32x8xbf16>
    %55 = vector.shape_cast %54 : vector<1x32x8xbf16> to vector<32x8xbf16>
    %cst_38 = arith.constant dense<0.000000e+00> : vector<32x8xf32>
    %56 = tpu.matmul %1, %55, %cst_38 {dimension_numbers = #tpu.dot_dimension_numbers<[1], [0], [0], [1], [0, 0, 1, 1], [], []>} : vector<32x32xbf16>, vector<32x8xbf16>, vector<32x8xf32> -> vector<32x8xf32>
    %c5_39 = arith.constant 5 : index
    %c0_40 = arith.constant 0 : index
    %c0_41 = arith.constant 0 : index
    %57 = vector.load %arg4[%c5_39, %c0_40, %c0_41] : memref<12x1x8xf32, #tpu.memory_space<vmem>>, vector<1x1x8xf32>
    %58 = vector.shape_cast %57 : vector<1x1x8xf32> to vector<1x8xf32>
    %59 = vector.broadcast %58 : vector<1x8xf32> to vector<32x8xf32>
    %60 = arith.addf %56, %59 : vector<32x8xf32>
    %c9 = arith.constant 9 : index
    %c0_42 = arith.constant 0 : index
    %c0_43 = arith.constant 0 : index
    %61 = vector.load %arg3[%c9, %c0_42, %c0_43] : memref<12x32x8xbf16, #tpu.memory_space<vmem>>, vector<1x32x8xbf16>
    %62 = vector.shape_cast %61 : vector<1x32x8xbf16> to vector<32x8xbf16>
    %cst_44 = arith.constant dense<0.000000e+00> : vector<32x8xf32>
    %63 = tpu.matmul %1, %62, %cst_44 {dimension_numbers = #tpu.dot_dimension_numbers<[1], [0], [0], [1], [0, 0, 1, 1], [], []>} : vector<32x32xbf16>, vector<32x8xbf16>, vector<32x8xf32> -> vector<32x8xf32>
    %c9_45 = arith.constant 9 : index
    %c0_46 = arith.constant 0 : index
    %c0_47 = arith.constant 0 : index
    %64 = vector.load %arg4[%c9_45, %c0_46, %c0_47] : memref<12x1x8xf32, #tpu.memory_space<vmem>>, vector<1x1x8xf32>
    %65 = vector.shape_cast %64 : vector<1x1x8xf32> to vector<1x8xf32>
    %66 = vector.broadcast %65 : vector<1x8xf32> to vector<32x8xf32>
    %67 = arith.addf %63, %66 : vector<32x8xf32>
    %68 = arith.truncf %53 : vector<32x8xf32> to vector<32x8xbf16>
    %69 = arith.truncf %60 : vector<32x8xf32> to vector<32x8xbf16>
    %cst_48 = arith.constant dense<0.000000e+00> : vector<32x32xf32>
    %70 = tpu.matmul %68, %69, %cst_48 {dimension_numbers = #tpu.dot_dimension_numbers<[1], [1], [0], [0], [0, 0, 1, 0], [], []>} : vector<32x8xbf16>, vector<32x8xbf16>, vector<32x32xf32> -> vector<32x32xf32>
    %71 = arith.addf %70, %2 : vector<32x32xf32>
    %cst_49 = arith.constant dense<0xFF800000> : vector<32xf32>
    %72 = vector.multi_reduction <maximumf>, %71, %cst_49 [1] : vector<32x32xf32> to vector<32xf32>
    %73 = vector.shape_cast %72 : vector<32xf32> to vector<32x1xf32>
    %74 = vector.broadcast %73 : vector<32x1xf32> to vector<32x32xf32>
    %75 = arith.subf %71, %74 : vector<32x32xf32>
    %76 = math.exp %75 : vector<32x32xf32>
    %cst_50 = arith.constant dense<0.000000e+00> : vector<32xf32>
    %77 = vector.multi_reduction <add>, %76, %cst_50 [1] : vector<32x32xf32> to vector<32xf32>
    %78 = vector.shape_cast %77 : vector<32xf32> to vector<32x1xf32>
    %79 = tpu.reciprocal %78 {approx = true} : vector<32x1xf32> -> vector<32x1xf32>
    %80 = vector.broadcast %79 : vector<32x1xf32> to vector<32x32xf32>
    %81 = arith.mulf %76, %80 : vector<32x32xf32>
    %82 = arith.truncf %81 : vector<32x32xf32> to vector<32x32xbf16>
    %83 = arith.truncf %67 : vector<32x8xf32> to vector<32x8xbf16>
    %cst_51 = arith.constant dense<0.000000e+00> : vector<32x8xf32>
    %84 = tpu.matmul %82, %83, %cst_51 {dimension_numbers = #tpu.dot_dimension_numbers<[1], [0], [0], [1], [0, 0, 1, 1], [], []>} : vector<32x32xbf16>, vector<32x8xbf16>, vector<32x8xf32> -> vector<32x8xf32>
    %85 = arith.truncf %84 : vector<32x8xf32> to vector<32x8xbf16>
    %c1_52 = arith.constant 1 : index
    %c0_53 = arith.constant 0 : index
    %c0_54 = arith.constant 0 : index
    %86 = vector.load %arg5[%c1_52, %c0_53, %c0_54] : memref<4x8x32xbf16, #tpu.memory_space<vmem>>, vector<1x8x32xbf16>
    %87 = vector.shape_cast %86 : vector<1x8x32xbf16> to vector<8x32xbf16>
    %cst_55 = arith.constant dense<0.000000e+00> : vector<32x32xf32>
    %88 = tpu.matmul %85, %87, %cst_55 {dimension_numbers = #tpu.dot_dimension_numbers<[1], [0], [0], [1], [0, 0, 1, 1], [], []>} : vector<32x8xbf16>, vector<8x32xbf16>, vector<32x32xf32> -> vector<32x32xf32>
    %89 = arith.addf %46, %88 : vector<32x32xf32>
    %c2 = arith.constant 2 : index
    %c0_56 = arith.constant 0 : index
    %c0_57 = arith.constant 0 : index
    %90 = vector.load %arg3[%c2, %c0_56, %c0_57] : memref<12x32x8xbf16, #tpu.memory_space<vmem>>, vector<1x32x8xbf16>
    %91 = vector.shape_cast %90 : vector<1x32x8xbf16> to vector<32x8xbf16>
    %cst_58 = arith.constant dense<0.000000e+00> : vector<32x8xf32>
    %92 = tpu.matmul %1, %91, %cst_58 {dimension_numbers = #tpu.dot_dimension_numbers<[1], [0], [0], [1], [0, 0, 1, 1], [], []>} : vector<32x32xbf16>, vector<32x8xbf16>, vector<32x8xf32> -> vector<32x8xf32>
    %c2_59 = arith.constant 2 : index
    %c0_60 = arith.constant 0 : index
    %c0_61 = arith.constant 0 : index
    %93 = vector.load %arg4[%c2_59, %c0_60, %c0_61] : memref<12x1x8xf32, #tpu.memory_space<vmem>>, vector<1x1x8xf32>
    %94 = vector.shape_cast %93 : vector<1x1x8xf32> to vector<1x8xf32>
    %95 = vector.broadcast %94 : vector<1x8xf32> to vector<32x8xf32>
    %96 = arith.addf %92, %95 : vector<32x8xf32>
    %c6 = arith.constant 6 : index
    %c0_62 = arith.constant 0 : index
    %c0_63 = arith.constant 0 : index
    %97 = vector.load %arg3[%c6, %c0_62, %c0_63] : memref<12x32x8xbf16, #tpu.memory_space<vmem>>, vector<1x32x8xbf16>
    %98 = vector.shape_cast %97 : vector<1x32x8xbf16> to vector<32x8xbf16>
    %cst_64 = arith.constant dense<0.000000e+00> : vector<32x8xf32>
    %99 = tpu.matmul %1, %98, %cst_64 {dimension_numbers = #tpu.dot_dimension_numbers<[1], [0], [0], [1], [0, 0, 1, 1], [], []>} : vector<32x32xbf16>, vector<32x8xbf16>, vector<32x8xf32> -> vector<32x8xf32>
    %c6_65 = arith.constant 6 : index
    %c0_66 = arith.constant 0 : index
    %c0_67 = arith.constant 0 : index
    %100 = vector.load %arg4[%c6_65, %c0_66, %c0_67] : memref<12x1x8xf32, #tpu.memory_space<vmem>>, vector<1x1x8xf32>
    %101 = vector.shape_cast %100 : vector<1x1x8xf32> to vector<1x8xf32>
    %102 = vector.broadcast %101 : vector<1x8xf32> to vector<32x8xf32>
    %103 = arith.addf %99, %102 : vector<32x8xf32>
    %c10 = arith.constant 10 : index
    %c0_68 = arith.constant 0 : index
    %c0_69 = arith.constant 0 : index
    %104 = vector.load %arg3[%c10, %c0_68, %c0_69] : memref<12x32x8xbf16, #tpu.memory_space<vmem>>, vector<1x32x8xbf16>
    %105 = vector.shape_cast %104 : vector<1x32x8xbf16> to vector<32x8xbf16>
    %cst_70 = arith.constant dense<0.000000e+00> : vector<32x8xf32>
    %106 = tpu.matmul %1, %105, %cst_70 {dimension_numbers = #tpu.dot_dimension_numbers<[1], [0], [0], [1], [0, 0, 1, 1], [], []>} : vector<32x32xbf16>, vector<32x8xbf16>, vector<32x8xf32> -> vector<32x8xf32>
    %c10_71 = arith.constant 10 : index
    %c0_72 = arith.constant 0 : index
    %c0_73 = arith.constant 0 : index
    %107 = vector.load %arg4[%c10_71, %c0_72, %c0_73] : memref<12x1x8xf32, #tpu.memory_space<vmem>>, vector<1x1x8xf32>
    %108 = vector.shape_cast %107 : vector<1x1x8xf32> to vector<1x8xf32>
    %109 = vector.broadcast %108 : vector<1x8xf32> to vector<32x8xf32>
    %110 = arith.addf %106, %109 : vector<32x8xf32>
    %111 = arith.truncf %96 : vector<32x8xf32> to vector<32x8xbf16>
    %112 = arith.truncf %103 : vector<32x8xf32> to vector<32x8xbf16>
    %cst_74 = arith.constant dense<0.000000e+00> : vector<32x32xf32>
    %113 = tpu.matmul %111, %112, %cst_74 {dimension_numbers = #tpu.dot_dimension_numbers<[1], [1], [0], [0], [0, 0, 1, 0], [], []>} : vector<32x8xbf16>, vector<32x8xbf16>, vector<32x32xf32> -> vector<32x32xf32>
    %114 = arith.addf %113, %2 : vector<32x32xf32>
    %cst_75 = arith.constant dense<0xFF800000> : vector<32xf32>
    %115 = vector.multi_reduction <maximumf>, %114, %cst_75 [1] : vector<32x32xf32> to vector<32xf32>
    %116 = vector.shape_cast %115 : vector<32xf32> to vector<32x1xf32>
    %117 = vector.broadcast %116 : vector<32x1xf32> to vector<32x32xf32>
    %118 = arith.subf %114, %117 : vector<32x32xf32>
    %119 = math.exp %118 : vector<32x32xf32>
    %cst_76 = arith.constant dense<0.000000e+00> : vector<32xf32>
    %120 = vector.multi_reduction <add>, %119, %cst_76 [1] : vector<32x32xf32> to vector<32xf32>
    %121 = vector.shape_cast %120 : vector<32xf32> to vector<32x1xf32>
    %122 = tpu.reciprocal %121 {approx = true} : vector<32x1xf32> -> vector<32x1xf32>
    %123 = vector.broadcast %122 : vector<32x1xf32> to vector<32x32xf32>
    %124 = arith.mulf %119, %123 : vector<32x32xf32>
    %125 = arith.truncf %124 : vector<32x32xf32> to vector<32x32xbf16>
    %126 = arith.truncf %110 : vector<32x8xf32> to vector<32x8xbf16>
    %cst_77 = arith.constant dense<0.000000e+00> : vector<32x8xf32>
    %127 = tpu.matmul %125, %126, %cst_77 {dimension_numbers = #tpu.dot_dimension_numbers<[1], [0], [0], [1], [0, 0, 1, 1], [], []>} : vector<32x32xbf16>, vector<32x8xbf16>, vector<32x8xf32> -> vector<32x8xf32>
    %128 = arith.truncf %127 : vector<32x8xf32> to vector<32x8xbf16>
    %c2_78 = arith.constant 2 : index
    %c0_79 = arith.constant 0 : index
    %c0_80 = arith.constant 0 : index
    %129 = vector.load %arg5[%c2_78, %c0_79, %c0_80] : memref<4x8x32xbf16, #tpu.memory_space<vmem>>, vector<1x8x32xbf16>
    %130 = vector.shape_cast %129 : vector<1x8x32xbf16> to vector<8x32xbf16>
    %cst_81 = arith.constant dense<0.000000e+00> : vector<32x32xf32>
    %131 = tpu.matmul %128, %130, %cst_81 {dimension_numbers = #tpu.dot_dimension_numbers<[1], [0], [0], [1], [0, 0, 1, 1], [], []>} : vector<32x8xbf16>, vector<8x32xbf16>, vector<32x32xf32> -> vector<32x32xf32>
    %132 = arith.addf %89, %131 : vector<32x32xf32>
    %c3 = arith.constant 3 : index
    %c0_82 = arith.constant 0 : index
    %c0_83 = arith.constant 0 : index
    %133 = vector.load %arg3[%c3, %c0_82, %c0_83] : memref<12x32x8xbf16, #tpu.memory_space<vmem>>, vector<1x32x8xbf16>
    %134 = vector.shape_cast %133 : vector<1x32x8xbf16> to vector<32x8xbf16>
    %cst_84 = arith.constant dense<0.000000e+00> : vector<32x8xf32>
    %135 = tpu.matmul %1, %134, %cst_84 {dimension_numbers = #tpu.dot_dimension_numbers<[1], [0], [0], [1], [0, 0, 1, 1], [], []>} : vector<32x32xbf16>, vector<32x8xbf16>, vector<32x8xf32> -> vector<32x8xf32>
    %c3_85 = arith.constant 3 : index
    %c0_86 = arith.constant 0 : index
    %c0_87 = arith.constant 0 : index
    %136 = vector.load %arg4[%c3_85, %c0_86, %c0_87] : memref<12x1x8xf32, #tpu.memory_space<vmem>>, vector<1x1x8xf32>
    %137 = vector.shape_cast %136 : vector<1x1x8xf32> to vector<1x8xf32>
    %138 = vector.broadcast %137 : vector<1x8xf32> to vector<32x8xf32>
    %139 = arith.addf %135, %138 : vector<32x8xf32>
    %c7 = arith.constant 7 : index
    %c0_88 = arith.constant 0 : index
    %c0_89 = arith.constant 0 : index
    %140 = vector.load %arg3[%c7, %c0_88, %c0_89] : memref<12x32x8xbf16, #tpu.memory_space<vmem>>, vector<1x32x8xbf16>
    %141 = vector.shape_cast %140 : vector<1x32x8xbf16> to vector<32x8xbf16>
    %cst_90 = arith.constant dense<0.000000e+00> : vector<32x8xf32>
    %142 = tpu.matmul %1, %141, %cst_90 {dimension_numbers = #tpu.dot_dimension_numbers<[1], [0], [0], [1], [0, 0, 1, 1], [], []>} : vector<32x32xbf16>, vector<32x8xbf16>, vector<32x8xf32> -> vector<32x8xf32>
    %c7_91 = arith.constant 7 : index
    %c0_92 = arith.constant 0 : index
    %c0_93 = arith.constant 0 : index
    %143 = vector.load %arg4[%c7_91, %c0_92, %c0_93] : memref<12x1x8xf32, #tpu.memory_space<vmem>>, vector<1x1x8xf32>
    %144 = vector.shape_cast %143 : vector<1x1x8xf32> to vector<1x8xf32>
    %145 = vector.broadcast %144 : vector<1x8xf32> to vector<32x8xf32>
    %146 = arith.addf %142, %145 : vector<32x8xf32>
    %c11 = arith.constant 11 : index
    %c0_94 = arith.constant 0 : index
    %c0_95 = arith.constant 0 : index
    %147 = vector.load %arg3[%c11, %c0_94, %c0_95] : memref<12x32x8xbf16, #tpu.memory_space<vmem>>, vector<1x32x8xbf16>
    %148 = vector.shape_cast %147 : vector<1x32x8xbf16> to vector<32x8xbf16>
    %cst_96 = arith.constant dense<0.000000e+00> : vector<32x8xf32>
    %149 = tpu.matmul %1, %148, %cst_96 {dimension_numbers = #tpu.dot_dimension_numbers<[1], [0], [0], [1], [0, 0, 1, 1], [], []>} : vector<32x32xbf16>, vector<32x8xbf16>, vector<32x8xf32> -> vector<32x8xf32>
    %c11_97 = arith.constant 11 : index
    %c0_98 = arith.constant 0 : index
    %c0_99 = arith.constant 0 : index
    %150 = vector.load %arg4[%c11_97, %c0_98, %c0_99] : memref<12x1x8xf32, #tpu.memory_space<vmem>>, vector<1x1x8xf32>
    %151 = vector.shape_cast %150 : vector<1x1x8xf32> to vector<1x8xf32>
    %152 = vector.broadcast %151 : vector<1x8xf32> to vector<32x8xf32>
    %153 = arith.addf %149, %152 : vector<32x8xf32>
    %154 = arith.truncf %139 : vector<32x8xf32> to vector<32x8xbf16>
    %155 = arith.truncf %146 : vector<32x8xf32> to vector<32x8xbf16>
    %cst_100 = arith.constant dense<0.000000e+00> : vector<32x32xf32>
    %156 = tpu.matmul %154, %155, %cst_100 {dimension_numbers = #tpu.dot_dimension_numbers<[1], [1], [0], [0], [0, 0, 1, 0], [], []>} : vector<32x8xbf16>, vector<32x8xbf16>, vector<32x32xf32> -> vector<32x32xf32>
    %157 = arith.addf %156, %2 : vector<32x32xf32>
    %cst_101 = arith.constant dense<0xFF800000> : vector<32xf32>
    %158 = vector.multi_reduction <maximumf>, %157, %cst_101 [1] : vector<32x32xf32> to vector<32xf32>
    %159 = vector.shape_cast %158 : vector<32xf32> to vector<32x1xf32>
    %160 = vector.broadcast %159 : vector<32x1xf32> to vector<32x32xf32>
    %161 = arith.subf %157, %160 : vector<32x32xf32>
    %162 = math.exp %161 : vector<32x32xf32>
    %cst_102 = arith.constant dense<0.000000e+00> : vector<32xf32>
    %163 = vector.multi_reduction <add>, %162, %cst_102 [1] : vector<32x32xf32> to vector<32xf32>
    %164 = vector.shape_cast %163 : vector<32xf32> to vector<32x1xf32>
    %165 = tpu.reciprocal %164 {approx = true} : vector<32x1xf32> -> vector<32x1xf32>
    %166 = vector.broadcast %165 : vector<32x1xf32> to vector<32x32xf32>
    %167 = arith.mulf %162, %166 : vector<32x32xf32>
    %168 = arith.truncf %167 : vector<32x32xf32> to vector<32x32xbf16>
    %169 = arith.truncf %153 : vector<32x8xf32> to vector<32x8xbf16>
    %cst_103 = arith.constant dense<0.000000e+00> : vector<32x8xf32>
    %170 = tpu.matmul %168, %169, %cst_103 {dimension_numbers = #tpu.dot_dimension_numbers<[1], [0], [0], [1], [0, 0, 1, 1], [], []>} : vector<32x32xbf16>, vector<32x8xbf16>, vector<32x8xf32> -> vector<32x8xf32>
    %171 = arith.truncf %170 : vector<32x8xf32> to vector<32x8xbf16>
    %c3_104 = arith.constant 3 : index
    %c0_105 = arith.constant 0 : index
    %c0_106 = arith.constant 0 : index
    %172 = vector.load %arg5[%c3_104, %c0_105, %c0_106] : memref<4x8x32xbf16, #tpu.memory_space<vmem>>, vector<1x8x32xbf16>
    %173 = vector.shape_cast %172 : vector<1x8x32xbf16> to vector<8x32xbf16>
    %cst_107 = arith.constant dense<0.000000e+00> : vector<32x32xf32>
    %174 = tpu.matmul %171, %173, %cst_107 {dimension_numbers = #tpu.dot_dimension_numbers<[1], [0], [0], [1], [0, 0, 1, 1], [], []>} : vector<32x8xbf16>, vector<8x32xbf16>, vector<32x32xf32> -> vector<32x32xf32>
    %175 = arith.addf %132, %174 : vector<32x32xf32>
    %c0_108 = arith.constant 0 : index
    %c0_109 = arith.constant 0 : index
    %176 = vector.load %arg6[%c0_108, %c0_109] : memref<1x32xf32, #tpu.memory_space<vmem>>, vector<1x32xf32>
    %177 = vector.broadcast %176 : vector<1x32xf32> to vector<32x32xf32>
    %178 = arith.addf %175, %177 : vector<32x32xf32>
    %179 = arith.addf %0, %178 : vector<32x32xf32>
    %c0_110 = arith.constant 0 : index
    %c0_111 = arith.constant 0 : index
    %180 = vector.load %arg7[%c0_110, %c0_111] : memref<1x32xf32, #tpu.memory_space<vmem>>, vector<1x32xf32>
    %c0_112 = arith.constant 0 : index
    %c0_113 = arith.constant 0 : index
    %181 = vector.load %arg8[%c0_112, %c0_113] : memref<1x32xf32, #tpu.memory_space<vmem>>, vector<1x32xf32>
    %cst_114 = arith.constant dense<0.000000e+00> : vector<32xf32>
    %182 = vector.multi_reduction <add>, %179, %cst_114 [1] : vector<32x32xf32> to vector<32xf32>
    %183 = vector.shape_cast %182 : vector<32xf32> to vector<32x1xf32>
    %cst_115 = arith.constant 3.200000e+01 : f32
    %184 = vector.broadcast %cst_115 : f32 to vector<32x1xf32>
    %185 = arith.divf %183, %184 : vector<32x1xf32>
    %186 = vector.broadcast %185 : vector<32x1xf32> to vector<32x32xf32>
    %187 = arith.subf %179, %186 : vector<32x32xf32>
    %188 = arith.mulf %187, %187 : vector<32x32xf32>
    %cst_116 = arith.constant dense<0.000000e+00> : vector<32xf32>
    %189 = vector.multi_reduction <add>, %188, %cst_116 [1] : vector<32x32xf32> to vector<32xf32>
    %190 = vector.shape_cast %189 : vector<32xf32> to vector<32x1xf32>
    %cst_117 = arith.constant 3.200000e+01 : f32
    %191 = vector.broadcast %cst_117 : f32 to vector<32x1xf32>
    %192 = arith.divf %190, %191 : vector<32x1xf32>
    %193 = vector.broadcast %185 : vector<32x1xf32> to vector<32x32xf32>
    %194 = arith.subf %179, %193 : vector<32x32xf32>
    %cst_118 = arith.constant 9.99999974E-6 : f32
    %195 = vector.broadcast %cst_118 : f32 to vector<32x1xf32>
    %196 = arith.addf %192, %195 : vector<32x1xf32>
    %197 = math.rsqrt %196 : vector<32x1xf32>
    %198 = vector.broadcast %197 : vector<32x1xf32> to vector<32x32xf32>
    %199 = arith.mulf %194, %198 : vector<32x32xf32>
    %200 = vector.broadcast %180 : vector<1x32xf32> to vector<32x32xf32>
    %201 = arith.mulf %199, %200 : vector<32x32xf32>
    %202 = vector.broadcast %181 : vector<1x32xf32> to vector<32x32xf32>
    %203 = arith.addf %201, %202 : vector<32x32xf32>
    %204 = arith.truncf %203 : vector<32x32xf32> to vector<32x32xbf16>
    %c0_119 = arith.constant 0 : index
    %c0_120 = arith.constant 0 : index
    %205 = vector.load %arg9[%c0_119, %c0_120] : memref<32x64xbf16, #tpu.memory_space<vmem>>, vector<32x64xbf16>
    %cst_121 = arith.constant dense<0.000000e+00> : vector<32x64xf32>
    %206 = tpu.matmul %204, %205, %cst_121 {dimension_numbers = #tpu.dot_dimension_numbers<[1], [0], [0], [1], [0, 0, 1, 1], [], []>} : vector<32x32xbf16>, vector<32x64xbf16>, vector<32x64xf32> -> vector<32x64xf32>
    %c0_122 = arith.constant 0 : index
    %c0_123 = arith.constant 0 : index
    %207 = vector.load %arg10[%c0_122, %c0_123] : memref<1x64xf32, #tpu.memory_space<vmem>>, vector<1x64xf32>
    %208 = vector.broadcast %207 : vector<1x64xf32> to vector<32x64xf32>
    %209 = arith.addf %206, %208 : vector<32x64xf32>
    %cst_124 = arith.constant 0.000000e+00 : f32
    %210 = vector.broadcast %cst_124 : f32 to vector<32x64xf32>
    %211 = arith.maximumf %209, %210 : vector<32x64xf32>
    %212 = arith.truncf %211 : vector<32x64xf32> to vector<32x64xbf16>
    %c0_125 = arith.constant 0 : index
    %c0_126 = arith.constant 0 : index
    %213 = vector.load %arg11[%c0_125, %c0_126] : memref<64x32xbf16, #tpu.memory_space<vmem>>, vector<64x32xbf16>
    %cst_127 = arith.constant dense<0.000000e+00> : vector<32x32xf32>
    %214 = tpu.matmul %212, %213, %cst_127 {dimension_numbers = #tpu.dot_dimension_numbers<[1], [0], [0], [1], [0, 0, 1, 1], [], []>} : vector<32x64xbf16>, vector<64x32xbf16>, vector<32x32xf32> -> vector<32x32xf32>
    %c0_128 = arith.constant 0 : index
    %c0_129 = arith.constant 0 : index
    %215 = vector.load %arg12[%c0_128, %c0_129] : memref<1x32xf32, #tpu.memory_space<vmem>>, vector<1x32xf32>
    %216 = vector.broadcast %215 : vector<1x32xf32> to vector<32x32xf32>
    %217 = arith.addf %214, %216 : vector<32x32xf32>
    %218 = arith.addf %203, %217 : vector<32x32xf32>
    %c0_130 = arith.constant 0 : index
    %c0_131 = arith.constant 0 : index
    %219 = vector.load %arg13[%c0_130, %c0_131] : memref<1x32xf32, #tpu.memory_space<vmem>>, vector<1x32xf32>
    %c0_132 = arith.constant 0 : index
    %c0_133 = arith.constant 0 : index
    %220 = vector.load %arg14[%c0_132, %c0_133] : memref<1x32xf32, #tpu.memory_space<vmem>>, vector<1x32xf32>
    %cst_134 = arith.constant dense<0.000000e+00> : vector<32xf32>
    %221 = vector.multi_reduction <add>, %218, %cst_134 [1] : vector<32x32xf32> to vector<32xf32>
    %222 = vector.shape_cast %221 : vector<32xf32> to vector<32x1xf32>
    %cst_135 = arith.constant 3.200000e+01 : f32
    %223 = vector.broadcast %cst_135 : f32 to vector<32x1xf32>
    %224 = arith.divf %222, %223 : vector<32x1xf32>
    %225 = vector.broadcast %224 : vector<32x1xf32> to vector<32x32xf32>
    %226 = arith.subf %218, %225 : vector<32x32xf32>
    %227 = arith.mulf %226, %226 : vector<32x32xf32>
    %cst_136 = arith.constant dense<0.000000e+00> : vector<32xf32>
    %228 = vector.multi_reduction <add>, %227, %cst_136 [1] : vector<32x32xf32> to vector<32xf32>
    %229 = vector.shape_cast %228 : vector<32xf32> to vector<32x1xf32>
    %cst_137 = arith.constant 3.200000e+01 : f32
    %230 = vector.broadcast %cst_137 : f32 to vector<32x1xf32>
    %231 = arith.divf %229, %230 : vector<32x1xf32>
    %232 = vector.broadcast %224 : vector<32x1xf32> to vector<32x32xf32>
    %233 = arith.subf %218, %232 : vector<32x32xf32>
    %cst_138 = arith.constant 9.99999974E-6 : f32
    %234 = vector.broadcast %cst_138 : f32 to vector<32x1xf32>
    %235 = arith.addf %231, %234 : vector<32x1xf32>
    %236 = math.rsqrt %235 : vector<32x1xf32>
    %237 = vector.broadcast %236 : vector<32x1xf32> to vector<32x32xf32>
    %238 = arith.mulf %233, %237 : vector<32x32xf32>
    %239 = vector.broadcast %219 : vector<1x32xf32> to vector<32x32xf32>
    %240 = arith.mulf %238, %239 : vector<32x32xf32>
    %241 = vector.broadcast %220 : vector<1x32xf32> to vector<32x32xf32>
    %242 = arith.addf %240, %241 : vector<32x32xf32>
    %c0_139 = arith.constant 0 : index
    %c0_140 = arith.constant 0 : index
    %243 = vector.load %arg15[%c0_139, %c0_140] : memref<32x32xf32, #tpu.memory_space<vmem>>, vector<32x32xf32>
    tpu.vector_store %arg15[%c0_139, %c0_140], %242 {strides = array<i32>} : memref<32x32xf32, #tpu.memory_space<vmem>>, vector<32x32xf32>,
    return
  }
  func.func @transform_0(%arg0: i32) -> (i32, i32) {
    %c0_i32 = arith.constant 0 : i32
    %c0_i32_0 = arith.constant 0 : i32
    %c0_i32_1 = arith.constant 0 : i32
    return %c0_i32, %c0_i32_0 : i32, i32
  }
  func.func @transform_1(%arg0: i32) -> (i32, i32) {
    %c0_i32 = arith.constant 0 : i32
    %c0_i32_0 = arith.constant 0 : i32
    %c0_i32_1 = arith.constant 0 : i32
    return %c0_i32, %c0_i32_0 : i32, i32
  }
  func.func @transform_2(%arg0: i32) -> (i32, i32, i32) {
    %c0_i32 = arith.constant 0 : i32
    %c0_i32_0 = arith.constant 0 : i32
    %c0_i32_1 = arith.constant 0 : i32
    %c0_i32_2 = arith.constant 0 : i32
    return %c0_i32, %c0_i32_0, %c0_i32_1 : i32, i32, i32
  }
  func.func @transform_3(%arg0: i32) -> (i32, i32, i32) {
    %c0_i32 = arith.constant 0 : i32
    %c0_i32_0 = arith.constant 0 : i32
    %c0_i32_1 = arith.constant 0 : i32
    %c0_i32_2 = arith.constant 0 : i32
    return %c0_i32, %c0_i32_0, %c0_i32_1 : i32, i32, i32
  }
  func.func @transform_4(%arg0: i32) -> (i32, i32, i32) {
    %c0_i32 = arith.constant 0 : i32
    %c0_i32_0 = arith.constant 0 : i32
    %c0_i32_1 = arith.constant 0 : i32
    %c0_i32_2 = arith.constant 0 : i32
    return %c0_i32, %c0_i32_0, %c0_i32_1 : i32, i32, i32
  }
  func.func @transform_5(%arg0: i32) -> (i32, i32) {
    %c0_i32 = arith.constant 0 : i32
    %c0_i32_0 = arith.constant 0 : i32
    %c0_i32_1 = arith.constant 0 : i32
    return %c0_i32, %c0_i32_0 : i32, i32
  }
  func.func @transform_6(%arg0: i32) -> (i32, i32) {
    %c0_i32 = arith.constant 0 : i32
    %c0_i32_0 = arith.constant 0 : i32
    %c0_i32_1 = arith.constant 0 : i32
    return %c0_i32, %c0_i32_0 : i32, i32
  }
  func.func @transform_7(%arg0: i32) -> (i32, i32) {
    %c0_i32 = arith.constant 0 : i32
    %c0_i32_0 = arith.constant 0 : i32
    %c0_i32_1 = arith.constant 0 : i32
    return %c0_i32, %c0_i32_0 : i32, i32
  }
  func.func @transform_8(%arg0: i32) -> (i32, i32) {
    %c0_i32 = arith.constant 0 : i32
    %c0_i32_0 = arith.constant 0 : i32
    %c0_i32_1 = arith.constant 0 : i32
    return %c0_i32, %c0_i32_0 : i32, i32
  }
  func.func @transform_9(%arg0: i32) -> (i32, i32) {
    %c0_i32 = arith.constant 0 : i32
    %c0_i32_0 = arith.constant 0 : i32
    %c0_i32_1 = arith.constant 0 : i32
    return %c0_i32, %c0_i32_0 : i32, i32
  }
  func.func @transform_10(%arg0: i32) -> (i32, i32) {
    %c0_i32 = arith.constant 0 : i32
    %c0_i32_0 = arith.constant 0 : i32
    %c0_i32_1 = arith.constant 0 : i32
    return %c0_i32, %c0_i32_0 : i32, i32
  }
  func.func @transform_11(%arg0: i32) -> (i32, i32) {
    %c0_i32 = arith.constant 0 : i32
    %c0_i32_0 = arith.constant 0 : i32
    %c0_i32_1 = arith.constant 0 : i32
    return %c0_i32, %c0_i32_0 : i32, i32
  }
  func.func @transform_12(%arg0: i32) -> (i32, i32) {
    %c0_i32 = arith.constant 0 : i32
    %c0_i32_0 = arith.constant 0 : i32
    %c0_i32_1 = arith.constant 0 : i32
    return %c0_i32, %c0_i32_0 : i32, i32
  }
  func.func @transform_13(%arg0: i32) -> (i32, i32) {
    %c0_i32 = arith.constant 0 : i32
    %c0_i32_0 = arith.constant 0 : i32
    %c0_i32_1 = arith.constant 0 : i32
    return %c0_i32, %c0_i32_0 : i32, i32
  }
  func.func @transform_14(%arg0: i32) -> (i32, i32) {
    %c0_i32 = arith.constant 0 : i32
    %c0_i32_0 = arith.constant 0 : i32
    %c0_i32_1 = arith.constant 0 : i32
    return %c0_i32, %c0_i32_0 : i32, i32
  }
}

</mosaic_0001>

<bundles_post_ra>
// kernel: eq.8
= control target key start
LH: loop header
LB: loop body
LE: loop exit
PB: predicated region body
PF: predicated region fallthrough
CT: control target
= control target key end

     0   :  { %s131_s10 = smov 30   ;;  %s132_s11 = smov 26   ;;  %vm3_vm0 = vcmask 15360   ;;  %vm9_vm1 = vcmask 261360   ;;  %vm15_vm2 = vcmask 244960   ;;  %vm21_vm3 = vcmask 228560   ;;  %s207_s0 = inlined_call_operand.vmem [shape: s32[16,2], index: 0, kind: input, shape index: {}]   ;;  %s208_s1 = inlined_call_operand.vmem [shape: s32[32], index: 1, kind: output, shape index: {}]  }
   0x1   :  { %v101_v0 = vld [vmem:[%s207_s0 + $0xf] sm:$0x1]   ;;  %v103_v1 = vld [vmem:[%s207_s0 + $0xd] sm:$0x1]   ;;  %v102_v2 = vld [vmem:[%s207_s0 + $0xe] sm:$0x1]  }
   0x2   :  { %7 = vrot.lane.b32.xlu0 %v101_v0, %s131_s10  ;;  %19 = vrot.lane.b32.xlu1 %v103_v1, %s132_s11  ;;  %v104_v3 = vld [vmem:[%s207_s0 + $0xc] sm:$0x1]   ;;  %s133_s16 = smov 28   ;;  %s134_s17 = smov 24   ;;  %v105_v4 = vld [vmem:[%s207_s0 + $0xb] sm:$0x1]  }
   0x3   :  { %v106_v5 = vld [vmem:[%s207_s0 + $0xa] sm:$0x1]   ;;  %v2_v6 = vld [vmem:[%s207_s0] sm:$0x1]   ;;  %s135_s24 = smov 22   ;;  %s136_s25 = smov 20  }
   0x4   :  { %4 = vst.msk [vmem:[#allocation0] sm:$0x1] %vm3_vm0, %v2_v6   ;;  %v107_v7 = vld [vmem:[%s207_s0 + $0x9] sm:$0x1]   ;;  %v108_v8 = vld [vmem:[%s207_s0 + $0x8] sm:$0x1]  }
   0x5   :  { %s137_s30 = smov 18   ;;  %s138_s2 = smov 16   ;;  %v109_v9 = vld [vmem:[%s207_s0 + $0x7] sm:$0x1]   ;;  %v110_v10 = vld [vmem:[%s207_s0 + $0x6] sm:$0x1]  }
   0x6   :  { %13 = vrot.lane.b32.xlu0 %v102_v2, %s133_s16  ;;  %25 = vrot.lane.b32.xlu1 %v104_v3, %s134_s17  ;;  %s139_s7 = smov 14   ;;  %s140_s8 = smov 12   ;;  %v111_v11 = vld [vmem:[%s207_s0 + $0x5] sm:$0x1]   ;;  %v112_v12 = vld [vmem:[%s207_s0 + $0x4] sm:$0x1]  }
   0x7   :  { %s141_s13 = smov 10   ;;  %s142_s14 = smov 8   ;;  %v113_v13 = vld [vmem:[%s207_s0 + $0x3] sm:$0x1]   ;;  %v114_v14 = vld [vmem:[%s207_s0 + $0x2] sm:$0x1]  }
   0x8   :  { %s143_s19 = smov 6   ;;  %s144_s20 = smov 4   ;;  %v115_v15 = vld [vmem:[%s207_s0 + $0x1] sm:$0x1]   ;;  %vm27_vm4 = vcmask 212160   ;;  %vm33_vm5 = vcmask 195760  }
   0x9   :  { %s145_s0 = smov 2   ;;  %vm39_vm6 = vcmask 179360   ;;  %vm45_vm7 = vcmask 162960   ;;  %vm51_vm8 = vcmask 146560   ;;  %vm57_vm9 = vcmask 130160  }
   0xa   :  { %31 = vrot.lane.b32.xlu0 %v105_v4, %s135_s24  ;;  %37 = vrot.lane.b32.xlu1 %v106_v5, %s136_s25  ;;  %vm63_vm10 = vcmask 113760   ;;  %vm69_vm11 = vcmask 97360   ;;  %vm75_vm12 = vcmask 80960   ;;  %vm81_vm13 = vcmask 64560  }
   0xb   :  { %vm87_vm14 = vcmask 48160   ;;  %vm93_vm15 = vcmask 31760  }
   0xe   :  { %43 = vrot.lane.b32.xlu0 %v107_v7, %s137_s30  ;;  %49 = vrot.lane.b32.xlu1 %v108_v8, %s138_s2 }
  0x12   :  { %55 = vrot.lane.b32.xlu0 %v109_v9, %s139_s7  ;;  %61 = vrot.lane.b32.xlu1 %v110_v10, %s140_s8 }
  0x16   :  { %67 = vrot.lane.b32.xlu0 %v111_v11, %s141_s13  ;;  %73 = vrot.lane.b32.xlu1 %v112_v12, %s142_s14 }
  0x1a   :  { %79 = vrot.lane.b32.xlu0 %v113_v13, %s143_s19  ;;  %85 = vrot.lane.b32.xlu1 %v114_v14, %s144_s20 }
  0x1e   :  { %91 = vrot.lane.b32.xlu0 %v115_v15, %s145_s0 }
  0x74   :  { %v8_v16 = vpop.permute.xlu0 %7   ;;  %v20_v17 = vpop.permute.xlu1 %19  }
  0x75   :  { %10 = vst.msk [vmem:[#allocation0] sm:$0x1] %vm9_vm1, %v8_v16  }
  0x78   :  { %v14_v18 = vpop.permute.xlu0 %13   ;;  %v26_v19 = vpop.permute.xlu1 %25  }
  0x79   :  { %16 = vst.msk [vmem:[#allocation0] sm:$0x1] %vm15_vm2, %v14_v18  }
  0x7a   :  { %22 = vst.msk [vmem:[#allocation0] sm:$0x1] %vm21_vm3, %v20_v17  }
  0x7b   :  { %28 = vst.msk [vmem:[#allocation0] sm:$0x1] %vm27_vm4, %v26_v19  }
  0x7c   :  { %v32_v20 = vpop.permute.xlu0 %31   ;;  %v38_v21 = vpop.permute.xlu1 %37  }
  0x7d   :  { %34 = vst.msk [vmem:[#allocation0] sm:$0x1] %vm33_vm5, %v32_v20  }
  0x7e   :  { %40 = vst.msk [vmem:[#allocation0] sm:$0x1] %vm39_vm6, %v38_v21  }
  0x80   :  { %v44_v22 = vpop.permute.xlu0 %43   ;;  %v50_v23 = vpop.permute.xlu1 %49  }
  0x81   :  { %46 = vst.msk [vmem:[#allocation0] sm:$0x1] %vm45_vm7, %v44_v22  }
  0x82   :  { %52 = vst.msk [vmem:[#allocation0] sm:$0x1] %vm51_vm8, %v50_v23  }
  0x84   :  { %v56_v24 = vpop.permute.xlu0 %55   ;;  %v62_v25 = vpop.permute.xlu1 %61  }
  0x85   :  { %58 = vst.msk [vmem:[#allocation0] sm:$0x1] %vm57_vm9, %v56_v24  }
  0x86   :  { %64 = vst.msk [vmem:[#allocation0] sm:$0x1] %vm63_vm10, %v62_v25  }
  0x88   :  { %v68_v26 = vpop.permute.xlu0 %67   ;;  %v74_v27 = vpop.permute.xlu1 %73  }
  0x89   :  { %70 = vst.msk [vmem:[#allocation0] sm:$0x1] %vm69_vm11, %v68_v26  }
  0x8a   :  { %76 = vst.msk [vmem:[#allocation0] sm:$0x1] %vm75_vm12, %v74_v27  }
  0x8c   :  { %v80_v28 = vpop.permute.xlu0 %79   ;;  %v86_v29 = vpop.permute.xlu1 %85  }
  0x8d   :  { %82 = vst.msk [vmem:[#allocation0] sm:$0x1] %vm81_vm13, %v80_v28  }
  0x8e   :  { %88 = vst.msk [vmem:[#allocation0] sm:$0x1] %vm87_vm14, %v86_v29  }
  0x90   :  { %v92_v30 = vpop.permute.xlu0 %91  }
  0x91   :  { %94 = vst.msk [vmem:[#allocation0] sm:$0x1] %vm93_vm15, %v92_v30  }
  0x98   :  { %v98_v31 = vld [vmem:[#allocation0] sm:$0x1] }
  0x99   :  { %100 = vst [vmem:[%s208_s1] sm:$0x1] %v98_v31 }

// kernel: cross_modal_attention.1
= control target key start
LH: loop header
LB: loop body
LE: loop exit
PB: predicated region body
PF: predicated region fallthrough
CT: control target
= control target key end

     0   :  { %vm82_vm0 = vcmask 261120   ;;  %s3361_s0 = inlined_call_operand.vmem [shape: f32[32,32], index: 0, kind: input, shape index: {}]   ;;  %s3362_s1 = inlined_call_operand.vmem [shape: f32[32,32], index: 1, kind: input, shape index: {}]   ;;  %s3363_s2 = inlined_call_operand.vmem [shape: bf16[12,32,8], index: 2, kind: input, shape index: {}]   ;;  %s3364_s3 = inlined_call_operand.vmem [shape: f32[12,1,8], index: 3, kind: input, shape index: {}]   ;;  %s3365_s4 = inlined_call_operand.vmem [shape: bf16[4,8,32], index: 4, kind: input, shape index: {}]   ;;  %s3366_s5 = inlined_call_operand.vmem [shape: f32[1,32], index: 5, kind: input, shape index: {}]   ;;  %s3367_s6 = inlined_call_operand.vmem [shape: f32[1,32], index: 6, kind: input, shape index: {}]   ;;  %s3368_s7 = inlined_call_operand.vmem [shape: f32[1,32], index: 7, kind: input, shape index: {}]   ;;  %s3369_s8 = inlined_call_operand.vmem [shape: bf16[32,64], index: 8, kind: input, shape index: {}]   ;;  %s3370_s9 = inlined_call_operand.vmem [shape: f32[1,64], index: 9, kind: input, shape index: {}]   ;;  %s3371_s10 = inlined_call_operand.vmem [shape: bf16[64,32], index: 10, kind: input, shape index: {}]   ;;  %s3372_s11 = inlined_call_operand.vmem [shape: f32[1,32], index: 11, kind: input, shape index: {}]   ;;  %s3373_s12 = inlined_call_operand.vmem [shape: f32[1,32], index: 12, kind: input, shape index: {}]   ;;  %s3374_s13 = inlined_call_operand.vmem [shape: f32[1,32], index: 13, kind: input, shape index: {}]   ;;  %s3375_s14 = inlined_call_operand.hbm [shape: f32[32,32], index: 14, kind: output, shape index: {}]  }
   0x1   :  { %v2742_v0 = vld [vmem:[%s3363_s2 + $0x40] sm:$0xff]   ;;  %v2743_v1 = vld [vmem:[%s3363_s2 + $0x48] sm:$0xff]   ;;  %v51_v4 = vld [vmem:[%s3361_s0 + $0x10] sm:$0xff] }
   0x2   :  { %2519 = vmatprep.subr.bf16.mxu1 %v2742_v0  ;;  %v49_v2 = vld [vmem:[%s3361_s0] sm:$0xff]  ;;  %v50_v3 = vld [vmem:[%s3361_s0 + $0x8] sm:$0xff]  ;;  %v52_v6 = vld [vmem:[%s3361_s0 + $0x18] sm:$0xff] }
   0x3   :  { %2520 = vmatpush3.bf16.msra.mxu1 %v2742_v0  ;;  %v2973_v5 = vpack.c.bf16 %v50_v3, %v49_v2  ;;  %v2744_v7 = vld [vmem:[%s3363_s2] sm:$0xff]   ;;  %v2745_v8 = vld [vmem:[%s3363_s2 + $0x8] sm:$0xff]   ;;  %v2988_v9 = vpack.c.bf16 %v52_v6, %v51_v4 }
   0x4   :  { %2521 = vmatprep.subr.bf16.mxu1 %v2743_v1  ;;  %2511 = vmatprep.subr.bf16.mxu0 %v2744_v7 }
   0x5   :  { %2523 = vmatprep.mubr.msk.bf16.mxu1 %vm82_vm0, %v2973_v5  ;;  %2515 = vmatprep.mubr.msk.bf16.mxu0 %vm82_vm0, %v2973_v5 }
   0x6   :  { %2512 = vmatpush3.bf16.msra.mxu0 %v2744_v7 }
   0x7   :  { %2522 = vmatpush3.bf16.msra.mxu1 %v2743_v1  ;;  %2513 = vmatprep.subr.bf16.mxu0 %v2745_v8 }
   0xa   :  { %2524 = vmatmul.mubr.msk.bf16.vlgmr.msra.gmra.mrb[0].mxu1 %vm82_vm0, %v2988_v9  ;;  %2514 = vmatpush3.bf16.msra.mxu0 %v2745_v8 }
   0xd   :  { %2516 = vmatmul.mubr.msk.bf16.vlgmr.msra.gmra.mrb[0].mxu0 %vm82_vm0, %v2988_v9 }
   0xe   :  { %2531 = vmatprep.mubr.msk.bf16.mxu0 %vm82_vm0, %v2973_v5 }
   0xf   :  { %19 = vsyncpa [#allocation3], 0  ;;  %v2260_v11 = vld [vmem:[%s3364_s3 + $0x4] ss:$0 sm:$0xff]  ;;  %v2250_v14 = vld [vmem:[%s3364_s3] ss:$0 sm:$0xff] }
  0x10   :  { %vm290_vm1 = vcmask 64512   ;;  %v2746_v34 = vld [vmem:[%s3363_s2 + $0x80] sm:$0xff]   ;;  %v2747_v35 = vld [vmem:[%s3363_s2 + $0x88] sm:$0xff]   ;;  %v3021_v36 = vld [vmem:[%s3362_s1 + $0x10] sm:$0xff]  ;;  %vm858_vm2 = vcmask 1043456   ;;  %vm2096_vm3 = vcmask 523264  }
  0x11   :  { %2527 = vmatprep.subr.bf16.mxu0 %v2746_v34  ;;  %v3026_v37 = vld [vmem:[%s3362_s1] sm:$0xff]  ;;  %v3031_v39 = vld [vmem:[%s3362_s1 + $0x18] sm:$0xff]  ;;  %v3037_v42 = vld [vmem:[%s3362_s1 + $0x8] sm:$0xff] }
  0x12   :  { %2528 = vmatpush3.bf16.msra.mxu0 %v2746_v34  ;;  %v2748_v52 = vld [vmem:[%s3363_s2 + $0x50] sm:$0xff]  }
  0x13   :  { %2529 = vmatprep.subr.bf16.mxu0 %v2747_v35 }
  0x16   :  { %2530 = vmatpush3.bf16.msra.mxu0 %v2747_v35 }
  0x19   :  { %2532 = vmatmul.mubr.msk.bf16.vlgmr.msra.gmra.mrb[4].mxu0 %vm82_vm0, %v2988_v9 }
  0xdd   :  { %v2525_v10 = vpop.f32.mrb[0].mxu1 }
  0xde   :  { %v197_v12 = vpop.f32.mrb[1].mxu1  ;;  %v206_v15 = vadd.f32 %v2525_v10, %v2260_v11 }
  0xdf   :  { %v2526_v13 = vpop.f32.mrb[2].mxu1  ;;  %v198_v18 = vadd.f32 %v2260_v11, %v197_v12  ;;  %v2270_v12 = vld [vmem:[%s3364_s3 + $0x8] ss:$0 sm:$0xff] }
  0xe0   :  { %v209_v16 = vadd.f32 %v2526_v13, %v2260_v11  ;;  %v200_v17 = vpop.f32.mrb[3].mxu1  ;;  %v2517_v20 = vpop.f32.mrb[0].mxu0  ;;  %v2749_v13 = vld [vmem:[%s3363_s2 + $0x58] sm:$0xff]  }
  0xe1   :  { %v201_v19 = vadd.f32 %v2260_v11, %v200_v17  ;;  %v132_v22 = vadd.f32 %v2517_v20, %v2250_v14  ;;  %v123_v23 = vpop.f32.mrb[1].mxu0 }
  0xe2   :  { %v289_v21 = vpack.c.bf16 %v209_v16, %v206_v15  ;;  %v124_v25 = vadd.f32 %v2250_v14, %v123_v23  ;;  %v2518_v26 = vpop.f32.mrb[2].mxu0  ;;  %v2750_v23 = vld [vmem:[%s3363_s2 + $0x10] sm:$0xff]  }
  0xe3   :  { %v288_v24 = vpack.c.bf16 %v201_v19, %v198_v18  ;;  %v135_v27 = vadd.f32 %v2518_v26, %v2250_v14  ;;  %v126_v28 = vpop.f32.mrb[3].mxu0 }
  0xe4   :  { %v127_v30 = vadd.f32 %v2250_v14, %v126_v28  ;;  %v301_v33 = vsel %vm290_vm1, %v289_v21, 0 }
  0xe5   :  { %2727 = vmatprep.subr.msk.bf16.mxu1 %vm290_vm1, %v288_v24  ;;  %v298_v29 = vsel %vm290_vm1, %v288_v24, 0  ;;  %v287_v31 = vpack.c.bf16 %v135_v27, %v132_v22 }
  0xe6   :  { %2536 = vmatpush3.bf16.xpose.msra.mxu1 %v298_v29  ;;  %v286_v32 = vpack.c.bf16 %v127_v30, %v124_v25 }
  0xe7   :  { %2728 = vmatprep.subr.msk.bf16.mxu1 %vm290_vm1, %v289_v21 }
  0xe8   :  { %2539 = vmatprep.mubr.msk.bf16.mxu1 %vm290_vm1, %v286_v32 }
  0xec   :  { %v2533_v53 = vpop.f32.mrb[4].mxu0 }
  0xed   :  { %v280_v14 = vadd.f32 %v2533_v53, %v2270_v12  ;;  %v271_v15 = vpop.f32.mrb[5].mxu0 }
  0xee   :  { %2538 = vmatpush3.bf16.xpose.msra.mxu1 %v301_v33  ;;  %v272_v16 = vadd.f32 %v2270_v12, %v271_v15  ;;  %v2534_v17 = vpop.f32.mrb[6].mxu0  ;;  %v2756_v15 = vld [vmem:[%s3363_s2 + $0x90] sm:$0xff]  }
  0xef   :  { %2559 = vmatprep.subr.bf16.mxu1 %v2748_v52  ;;  %v283_v18 = vadd.f32 %v2534_v17, %v2270_v12  ;;  %v274_v19 = vpop.f32.mrb[7].mxu0 }
  0xf0   :  { %v275_v20 = vadd.f32 %v2270_v12, %v274_v19  ;;  %v2753_v12 = vld [vmem:[%s3363_s2 + $0x28] sm:$0xff]  }
  0xf1   :  { %v399_v21 = vpack.c.bf16 %v283_v18, %v280_v14  ;;  %v2755_v14 = vld [vmem:[%s3363_s2 + $0x68] sm:$0xff]  }
  0xf2   :  { %v398_v22 = vpack.c.bf16 %v275_v20, %v272_v16  ;;  %v2757_v16 = vld [vmem:[%s3363_s2 + $0x98] sm:$0xff]  }
  0xf4   :  { %2543 = vmatprep.subr.bf16.mxu0 %v398_v22 }
  0xf5   :  { %2540 = vmatmul.mubr.msk.bf16.vlgmr.msra.gmra.mrb[4].mxu1 %vm290_vm1, %v287_v31  ;;  %2544 = vmatpush3.bf16.msra.mxu0 %v398_v22 }
  0xf6   :  { %2563 = vmatprep.mubr.msk.bf16.mxu1 %vm82_vm0, %v2973_v5  ;;  %2560 = vmatpush3.bf16.msra.mxu1 %v2748_v52 }
  0xf7   :  { %2561 = vmatprep.subr.bf16.mxu1 %v2749_v13  ;;  %2545 = vmatprep.subr.bf16.mxu0 %v399_v21 }
  0xf9   :  { %2546 = vmatpush3.bf16.msra.mxu0 %v399_v21 }
  0xfa   :  { %2562 = vmatpush3.bf16.msra.mxu1 %v2749_v13  ;;  %2551 = vmatprep.subr.bf16.mxu0 %v2750_v23  ;;  %v2754_v13 = vld [vmem:[%s3363_s2 + $0x60] sm:$0xff]  }
  0xfd   :  { %2564 = vmatmul.mubr.msk.bf16.vlgmr.msra.gmra.mrb[8].mxu1 %vm82_vm0, %v2988_v9 }
 0x1c8   :  { %v2541_v38 = vpop.f32.mrb[4].mxu1 }
 0x1c9   :  { %v346_v40 = vadd.f32 %v2541_v38, %v3021_v36  ;;  %v337_v41 = vpop.f32.mrb[5].mxu1 }
 0x1ca   :  { %v338_v43 = vadd.f32 %v337_v41, %v3026_v37  ;;  %v2542_v44 = vpop.f32.mrb[6].mxu1  ;;  %v2751_v41 = vld [vmem:[%s3363_s2 + $0x18] sm:$0xff]  }
 0x1cb   :  { %v349_v45 = vadd.f32 %v2542_v44, %v3031_v39  ;;  %v340_v46 = vpop.f32.mrb[7].mxu1  ;;  %v358_v47 = vsel %vm82_vm0, %v346_v40, -inf }
 0x1cc   :  { %v341_v48 = vadd.f32 %v340_v46, %v3037_v42  ;;  %359 = vmax.xlane.f32.xlu1 %v358_v47  ;;  %v352_v49 = vsel %vm82_vm0, %v338_v43, -inf }
 0x1cd   :  { %353 = vmax.xlane.f32.xlu0 %v352_v49  ;;  %v361_v50 = vsel %vm82_vm0, %v349_v45, -inf }
 0x1ce   :  { %v355_v51 = vsel %vm82_vm0, %v341_v48, -inf }
 0x1d0   :  { %362 = vmax.xlane.f32.xlu1 %v361_v50  ;;  %v2565_v44 = vpop.f32.mrb[8].mxu1 }
 0x1d1   :  { %356 = vmax.xlane.f32.xlu0 %v355_v51  ;;  %v591_v46 = vpop.f32.mrb[9].mxu1 }
 0x259   :  { %v360_v54 = vpop.xlane.xlu1 %359 }
 0x25a   :  { %v366_v55 = vsub.f32 %v346_v40, %v360_v54  ;;  %v354_v56 = vpop.xlane.xlu0 %353 }
 0x25b   :  { %v364_v57 = vsub.f32 %v338_v43, %v354_v56  ;;  %v2294_v43 = vld [vmem:[%s3364_s3 + $0x5] ss:$0 sm:$0xff] }
 0x25c   :  { %v372_v58 = vmul.f32 1.442695, %v366_v55  ;;  %v592_v47 = vadd.f32 %v2294_v43, %v591_v46  ;;  %v2752_v56 = vld [vmem:[%s3363_s2 + $0x20] sm:$0xff]  }
 0x25d   :  { %v368_v59 = vmul.f32 1.442695, %v364_v57  ;;  %v363_v60 = vpop.xlane.xlu1 %362 }
 0x25e   :  { %v367_v61 = vsub.f32 %v349_v45, %v363_v60  ;;  %v357_v62 = vpop.xlane.xlu0 %356  ;;  %v600_v45 = vadd.f32 %v2565_v44, %v2294_v43  ;;  %v2333_v44 = vld [vmem:[%s3364_s3 + $0x6] ss:$0 sm:$0xff] }
 0x25f   :  { %2772 = vpow2.f32 %v368_v59  ;;  %v365_v63 = vsub.f32 %v341_v48, %v357_v62  ;;  %v2566_v48 = vpop.f32.mrb[10].mxu1 }
 0x260   :  { %2774 = vpow2.f32 %v372_v58  ;;  %v374_v0 = vmul.f32 1.442695, %v367_v61  ;;  %v603_v49 = vadd.f32 %v2566_v48, %v2294_v43  ;;  %v594_v50 = vpop.f32.mrb[11].mxu1 }
 0x261   :  { %v370_v1 = vmul.f32 1.442695, %v365_v63  ;;  %v595_v51 = vadd.f32 %v2294_v43, %v594_v50 }
 0x262   :  { %v683_v52 = vpack.c.bf16 %v603_v49, %v600_v45 }
 0x263   :  { %2776 = vpow2.f32 %v370_v1  ;;  %v682_v53 = vpack.c.bf16 %v595_v51, %v592_v47 }
 0x264   :  { %2778 = vpow2.f32 %v374_v0  ;;  %v694_v55 = vsel %vm290_vm1, %v683_v52, 0  ;;  %v2284_v0 = vld [vmem:[%s3364_s3 + $0x1] ss:$0 sm:$0xff] }
 0x265   :  { %2729 = vmatprep.subr.msk.bf16.mxu1 %vm290_vm1, %v682_v53  ;;  %v691_v54 = vsel %vm290_vm1, %v682_v53, 0 }
 0x266   :  { %2576 = vmatpush3.bf16.xpose.msra.mxu1 %v691_v54 }
 0x267   :  { %2730 = vmatprep.subr.msk.bf16.mxu1 %vm290_vm1, %v683_v52 }
 0x269   :  { %v2773_v2 = vpop.eup %2772 }
 0x26a   :  { %v376_v3 = vsel %vm82_vm0, %v2773_v2, 0.0  ;;  %v2775_v4 = vpop.eup %2774 }
 0x26b   :  { %377 = vadd.xlane.f32.xlu0 %v376_v3  ;;  %v382_v7 = vsel %vm82_vm0, %v2775_v4, 0.0 }
 0x26d   :  { %v2777_v6 = vpop.eup %2776 }
 0x26e   :  { %v379_v8 = vsel %vm82_vm0, %v2777_v6, 0.0  ;;  %v2779_v10 = vpop.eup %2778  ;;  %2578 = vmatpush3.bf16.xpose.msra.mxu1 %v694_v55 }
 0x26f   :  { %383 = vadd.xlane.f32.xlu0 %v382_v7  ;;  %380 = vadd.xlane.f32.xlu1 %v379_v8  ;;  %v385_v11 = vsel %vm82_vm0, %v2779_v10, 0.0 }
 0x270   :  { %2603 = vmatprep.subr.bf16.mxu1 %v2752_v56 }
 0x273   :  { %386 = vadd.xlane.f32.xlu1 %v385_v11 }
 0x2f8   :  { %v378_v24 = vpop.xlane.xlu0 %377 }
 0x2f9   :  { %2780 = vrcp.f32 %v378_v24 }
 0x2fc   :  { %v381_v25 = vpop.xlane.xlu1 %380  ;;  %v384_v26 = vpop.xlane.xlu0 %383 }
 0x2fd   :  { %2782 = vrcp.f32 %v381_v25 }
 0x2fe   :  { %2784 = vrcp.f32 %v384_v26 }
 0x300   :  { %v387_v27 = vpop.xlane.xlu1 %386 }
 0x301   :  { %2786 = vrcp.f32 %v387_v27  ;;  %v2323_v27 = vld [vmem:[%s3364_s3 + $0x2] ss:$0 sm:$0xff] }
 0x303   :  { %v2781_v28 = vpop.eup %2780 }
 0x304   :  { %v392_v30 = vmul.f32 %v2781_v28, %v2773_v2 }
 0x307   :  { %v2783_v29 = vpop.eup %2782 }
 0x308   :  { %v393_v31 = vmul.f32 %v2783_v29, %v2777_v6  ;;  %v2785_v32 = vpop.eup %2784 }
 0x309   :  { %v394_v35 = vmul.f32 %v2785_v32, %v2775_v4 }
 0x30a   :  { %v396_v33 = vpack.c.bf16 %v393_v31, %v392_v30 }
 0x30b   :  { %v2787_v34 = vpop.eup %2786 }
 0x30c   :  { %v395_v38 = vmul.f32 %v2787_v34, %v2779_v10  ;;  %2547 = vmatprep.mubr.msk.bf16.mxu0 %vm82_vm0, %v396_v33 }
 0x30e   :  { %v397_v40 = vpack.c.bf16 %v395_v38, %v394_v35 }
 0x310   :  { %2548 = vmatmul.mubr.msk.bf16.vlgmr.msra.gmra.mrb[8].mxu0 %vm82_vm0, %v397_v40 }
 0x311   :  { %2552 = vmatpush3.bf16.msra.mxu0 %v2750_v23  ;;  %2555 = vmatprep.mubr.msk.bf16.mxu0 %vm82_vm0, %v2973_v5 }
 0x312   :  { %2553 = vmatprep.subr.bf16.mxu0 %v2751_v41 }
 0x315   :  { %2554 = vmatpush3.bf16.msra.mxu0 %v2751_v41 }
 0x316   :  { %2567 = vmatprep.subr.bf16.mxu0 %v2756_v15 }
 0x318   :  { %2556 = vmatmul.mubr.msk.bf16.vlgmr.msra.gmra.mrb[12].mxu0 %vm82_vm0, %v2988_v9 }
 0x319   :  { %2571 = vmatprep.mubr.msk.bf16.mxu0 %vm82_vm0, %v2973_v5  ;;  %2568 = vmatpush3.bf16.msra.mxu0 %v2756_v15 }
 0x31a   :  { %2569 = vmatprep.subr.bf16.mxu0 %v2757_v16 }
 0x31d   :  { %2570 = vmatpush3.bf16.msra.mxu0 %v2757_v16 }
 0x320   :  { %2572 = vmatmul.mubr.msk.bf16.vlgmr.msra.gmra.mrb[16].mxu0 %vm82_vm0, %v2988_v9 }
 0x3e3   :  { %v3085_v57 = vpop.f32.mrb[8].mxu0 }
 0x3e4   :  { %v3087_v58 = vpop.f32.mrb[9].mxu0 }
 0x3e5   :  { %v3089_v59 = vpop.f32.mrb[10].mxu0 }
 0x3e6   :  { %v456_v60 = vpack.c.bf16 %v3089_v59, %v3085_v57  ;;  %v3093_v61 = vpop.f32.mrb[11].mxu0 }
 0x3e7   :  { %v455_v62 = vpack.c.bf16 %v3093_v61, %v3087_v58 }
 0x3eb   :  { %v2557_v63 = vpop.f32.mrb[12].mxu0 }
 0x3ec   :  { %v517_v1 = vpop.f32.mrb[13].mxu0  ;;  %v526_v3 = vadd.f32 %v2557_v63, %v2284_v0 }
 0x3ed   :  { %v2558_v2 = vpop.f32.mrb[14].mxu0  ;;  %v518_v7 = vadd.f32 %v2284_v0, %v517_v1 }
 0x3ee   :  { %v529_v4 = vadd.f32 %v2558_v2, %v2284_v0  ;;  %v520_v6 = vpop.f32.mrb[15].mxu0 }
 0x3ef   :  { %v521_v8 = vadd.f32 %v2284_v0, %v520_v6  ;;  %v2304_v0 = vld [vmem:[%s3364_s3 + $0x9] ss:$0 sm:$0xff] }
 0x3f0   :  { %v681_v10 = vpack.c.bf16 %v529_v4, %v526_v3 }
 0x3f1   :  { %v680_v11 = vpack.c.bf16 %v521_v8, %v518_v7 }
 0x3f3   :  { %2579 = vmatprep.mubr.msk.bf16.mxu1 %vm290_vm1, %v680_v11  ;;  %v2573_v63 = vpop.f32.mrb[16].mxu0 }
 0x3f4   :  { %2580 = vmatmul.mubr.msk.bf16.vlgmr.msra.gmra.mrb[12].mxu1 %vm290_vm1, %v681_v10  ;;  %v674_v1 = vadd.f32 %v2573_v63, %v2304_v0  ;;  %v665_v2 = vpop.f32.mrb[17].mxu0 }
 0x3f5   :  { %2604 = vmatpush3.bf16.msra.mxu1 %v2752_v56  ;;  %2607 = vmatprep.mubr.msk.bf16.mxu1 %vm82_vm0, %v2973_v5  ;;  %v2574_v3 = vpop.f32.mrb[18].mxu0 }
 0x3f6   :  { %2605 = vmatprep.subr.bf16.mxu1 %v2753_v12  ;;  %v677_v4 = vadd.f32 %v2574_v3, %v2304_v0 }
 0x3f8   :  { %v792_v6 = vpack.c.bf16 %v677_v4, %v674_v1 }
 0x3f9   :  { %2606 = vmatpush3.bf16.msra.mxu1 %v2753_v12 }
 0x3fa   :  { %2611 = vmatprep.subr.bf16.mxu1 %v2754_v13 }
 0x3fc   :  { %2608 = vmatmul.mubr.msk.bf16.vlgmr.msra.gmra.mrb[16].mxu1 %vm82_vm0, %v2988_v9 }
 0x3fd   :  { %2612 = vmatpush3.bf16.msra.mxu1 %v2754_v13  ;;  %2615 = vmatprep.mubr.msk.bf16.mxu1 %vm82_vm0, %v2973_v5 }
 0x3fe   :  { %2613 = vmatprep.subr.bf16.mxu1 %v2755_v14 }
 0x401   :  { %2614 = vmatpush3.bf16.msra.mxu1 %v2755_v14 }
 0x404   :  { %2616 = vmatmul.mubr.msk.bf16.vlgmr.msra.gmra.mrb[20].mxu1 %vm82_vm0, %v2988_v9 }
 0x4c7   :  { %v2581_v17 = vpop.f32.mrb[12].mxu1 }
 0x4c8   :  { %v730_v18 = vpop.f32.mrb[13].mxu1  ;;  %v739_v22 = vadd.f32 %v2581_v17, %v3021_v36 }
 0x4c9   :  { %v731_v19 = vadd.f32 %v730_v18, %v3026_v37  ;;  %v2582_v20 = vpop.f32.mrb[14].mxu1 }
 0x4ca   :  { %v733_v21 = vpop.f32.mrb[15].mxu1  ;;  %v742_v25 = vadd.f32 %v2582_v20, %v3031_v39  ;;  %v751_v28 = vsel %vm82_vm0, %v739_v22, -inf }
 0x4cb   :  { %v734_v23 = vadd.f32 %v733_v21, %v3037_v42  ;;  %v745_v24 = vsel %vm82_vm0, %v731_v19, -inf }
 0x4cc   :  { %746 = vmax.xlane.f32.xlu0 %v745_v24  ;;  %v754_v32 = vsel %vm82_vm0, %v742_v25, -inf }
 0x4cd   :  { %v748_v26 = vsel %vm82_vm0, %v734_v23, -inf }
 0x4ce   :  { %749 = vmax.xlane.f32.xlu1 %v748_v26 }
 0x4cf   :  { %v2609_v29 = vpop.f32.mrb[16].mxu1 }
 0x4d0   :  { %752 = vmax.xlane.f32.xlu0 %v751_v28  ;;  %v1037_v30 = vadd.f32 %v2609_v29, %v2323_v27  ;;  %v1028_v31 = vpop.f32.mrb[17].mxu1  ;;  %v668_v29 = vpop.f32.mrb[19].mxu0 }
 0x4d1   :  { %v1029_v33 = vadd.f32 %v2323_v27, %v1028_v31  ;;  %v2610_v34 = vpop.f32.mrb[18].mxu1 }
 0x4d2   :  { %755 = vmax.xlane.f32.xlu1 %v754_v32  ;;  %v1040_v35 = vadd.f32 %v2610_v34, %v2323_v27  ;;  %v1031_v38 = vpop.f32.mrb[19].mxu1 }
 0x4d3   :  { %v1032_v40 = vadd.f32 %v2323_v27, %v1031_v38 }
 0x4d4   :  { %v1192_v41 = vpack.c.bf16 %v1040_v35, %v1037_v30  ;;  %v669_v30 = vadd.f32 %v2304_v0, %v668_v29 }
 0x4d5   :  { %v1191_v43 = vpack.c.bf16 %v1032_v40, %v1029_v33 }
 0x4d7   :  { %v2617_v45 = vpop.f32.mrb[20].mxu1  ;;  %2631 = vmatprep.mubr.msk.bf16.mxu1 %vm290_vm1, %v1191_v43 }
 0x4d8   :  { %v1111_v46 = vadd.f32 %v2617_v45, %v2333_v44  ;;  %v1102_v47 = vpop.f32.mrb[21].mxu1 }
 0x4d9   :  { %v1103_v48 = vadd.f32 %v2333_v44, %v1102_v47  ;;  %v2618_v49 = vpop.f32.mrb[22].mxu1 }
 0x4da   :  { %v1114_v50 = vadd.f32 %v2618_v49, %v2333_v44  ;;  %v1105_v51 = vpop.f32.mrb[23].mxu1 }
 0x4db   :  { %v1106_v52 = vadd.f32 %v2333_v44, %v1105_v51 }
 0x4dc   :  { %v1194_v53 = vpack.c.bf16 %v1114_v50, %v1111_v46 }
 0x4dd   :  { %v1193_v54 = vpack.c.bf16 %v1106_v52, %v1103_v48  ;;  %v2313_v48 = vld [vmem:[%s3365_s4 + $0x4] sm:$0xf] }
 0x4de   :  { %v1205_v56 = vsel %vm290_vm1, %v1194_v53, 0 }
 0x4df   :  { %2733 = vmatprep.subr.msk.bf16.mxu1 %vm290_vm1, %v1193_v54  ;;  %v1202_v55 = vsel %vm290_vm1, %v1193_v54, 0 }
 0x4e0   :  { %2628 = vmatpush3.bf16.xpose.msra.mxu1 %v1202_v55 }
 0x4e1   :  { %2734 = vmatprep.subr.msk.bf16.mxu1 %vm290_vm1, %v1194_v53 }
 0x4e8   :  { %2630 = vmatpush3.bf16.xpose.msra.mxu1 %v1205_v56 }
 0x4ef   :  { %2632 = vmatmul.mubr.msk.bf16.vlgmr.msra.gmra.mrb[24].mxu1 %vm290_vm1, %v1192_v41 }
 0x4f0   :  { %2653 = vmatprep.mubr.msk.bf16.mxu1 %vm82_vm0, %v2973_v5 }
 0x559   :  { %v747_v7 = vpop.xlane.xlu0 %746 }
 0x55a   :  { %v757_v8 = vsub.f32 %v731_v19, %v747_v7 }
 0x55b   :  { %v750_v10 = vpop.xlane.xlu1 %749 }
 0x55c   :  { %v761_v11 = vmul.f32 1.442695, %v757_v8  ;;  %v758_v12 = vsub.f32 %v734_v23, %v750_v10 }
 0x55d   :  { %v753_v13 = vpop.xlane.xlu0 %752 }
 0x55e   :  { %2788 = vpow2.f32 %v761_v11  ;;  %v763_v14 = vmul.f32 1.442695, %v758_v12  ;;  %v759_v15 = vsub.f32 %v739_v22, %v753_v13 }
 0x55f   :  { %v756_v16 = vpop.xlane.xlu1 %755 }
 0x560   :  { %2790 = vpow2.f32 %v763_v14  ;;  %v765_v17 = vmul.f32 1.442695, %v759_v15  ;;  %v760_v18 = vsub.f32 %v742_v25, %v756_v16  ;;  %v666_v25 = vadd.f32 %v2304_v0, %v665_v2 }
 0x562   :  { %2792 = vpow2.f32 %v765_v17  ;;  %v767_v20 = vmul.f32 1.442695, %v760_v18  ;;  %v791_v31 = vpack.c.bf16 %v669_v30, %v666_v25 }
 0x564   :  { %2794 = vpow2.f32 %v767_v20  ;;  %2583 = vmatprep.subr.bf16.mxu0 %v791_v31  ;;  %v860_v20 = vsel %vm858_vm2, %v2313_v48, 0 }
 0x565   :  { %2584 = vmatpush3.bf16.msra.mxu0 %v791_v31 }
 0x566   :  { %2585 = vmatprep.subr.bf16.mxu0 %v792_v6 }
 0x568   :  { %v2789_v21 = vpop.eup %2788 }
 0x569   :  { %v769_v24 = vsel %vm82_vm0, %v2789_v21, 0.0  ;;  %2586 = vmatpush3.bf16.msra.mxu0 %v792_v6 }
 0x56a   :  { %v2791_v26 = vpop.eup %2790  ;;  %770 = vadd.xlane.f32.xlu0 %v769_v24  ;;  %2731 = vmatprep.subr.msk.bf16.mxu0 %vm858_vm2, %v2313_v48 }
 0x56b   :  { %v772_v19 = vsel %vm82_vm0, %v2791_v26, 0.0 }
 0x56c   :  { %v2793_v27 = vpop.eup %2792  ;;  %773 = vadd.xlane.f32.xlu1 %v772_v19 }
 0x56d   :  { %v775_v23 = vsel %vm82_vm0, %v2793_v27, 0.0 }
 0x56e   :  { %v2795_v28 = vpop.eup %2794  ;;  %776 = vadd.xlane.f32.xlu0 %v775_v23  ;;  %v457_v23 = vld [vmem:[%s3365_s4] sm:$0xf] }
 0x56f   :  { %v778_v22 = vsel %vm82_vm0, %v2795_v28, 0.0 }
 0x570   :  { %779 = vadd.xlane.f32.xlu1 %v778_v22 }
 0x5c2   :  { %v2633_v32 = vpop.f32.mrb[24].mxu1 }
 0x5c3   :  { %v1241_v33 = vpop.f32.mrb[25].mxu1  ;;  %v1250_v34 = vadd.f32 %v2633_v32, %v3021_v36 }
 0x5c4   :  { %v1242_v35 = vadd.f32 %v1241_v33, %v3026_v37  ;;  %v2634_v38 = vpop.f32.mrb[26].mxu1 }
 0x5c5   :  { %v1244_v40 = vpop.f32.mrb[27].mxu1  ;;  %v1253_v41 = vadd.f32 %v2634_v38, %v3031_v39  ;;  %v1262_v46 = vsel %vm82_vm0, %v1250_v34, -inf  ;;  %v2758_v38 = vld [vmem:[%s3363_s2 + $0xa0] sm:$0xff]  }
 0x5c6   :  { %v1245_v43 = vadd.f32 %v1244_v40, %v3037_v42  ;;  %v1256_v44 = vsel %vm82_vm0, %v1242_v35, -inf  ;;  %v2759_v40 = vld [vmem:[%s3363_s2 + $0xa8] sm:$0xff]  }
 0x5c7   :  { %1257 = vmax.xlane.f32.xlu0 %v1256_v44  ;;  %v1265_v47 = vsel %vm82_vm0, %v1253_v41, -inf }
 0x5c8   :  { %v1259_v45 = vsel %vm82_vm0, %v1245_v43, -inf }
 0x5c9   :  { %1260 = vmax.xlane.f32.xlu1 %v1259_v45 }
 0x5cb   :  { %1263 = vmax.xlane.f32.xlu0 %v1262_v46  ;;  %v2343_v46 = vld [vmem:[%s3364_s3 + $0xa] ss:$0 sm:$0xff] }
 0x5cd   :  { %1266 = vmax.xlane.f32.xlu1 %v1265_v47 }
 0x5f7   :  { %v771_v49 = vpop.xlane.xlu0 %770 }
 0x5f8   :  { %2796 = vrcp.f32 %v771_v49 }
 0x5f9   :  { %v774_v50 = vpop.xlane.xlu1 %773 }
 0x5fa   :  { %2798 = vrcp.f32 %v774_v50 }
 0x5fb   :  { %v777_v51 = vpop.xlane.xlu0 %776 }
 0x5fc   :  { %2800 = vrcp.f32 %v777_v51 }
 0x5fd   :  { %v780_v52 = vpop.xlane.xlu1 %779 }
 0x5fe   :  { %2802 = vrcp.f32 %v780_v52 }
 0x602   :  { %v2797_v53 = vpop.eup %2796 }
 0x603   :  { %v785_v55 = vmul.f32 %v2797_v53, %v2789_v21 }
 0x604   :  { %v2799_v54 = vpop.eup %2798 }
 0x605   :  { %v786_v56 = vmul.f32 %v2799_v54, %v2791_v26 }
 0x606   :  { %v2801_v63 = vpop.eup %2800 }
 0x607   :  { %v789_v0 = vpack.c.bf16 %v786_v56, %v785_v55  ;;  %v787_v2 = vmul.f32 %v2801_v63, %v2793_v27 }
 0x608   :  { %v2803_v1 = vpop.eup %2802 }
 0x609   :  { %v788_v3 = vmul.f32 %v2803_v1, %v2795_v28  ;;  %2587 = vmatprep.mubr.msk.bf16.mxu0 %vm82_vm0, %v789_v0  ;;  %v2352_v1 = vld [vmem:[%s3365_s4 + $0x8] sm:$0xf] }
 0x60b   :  { %v790_v4 = vpack.c.bf16 %v788_v3, %v787_v2 }
 0x60d   :  { %2588 = vmatmul.mubr.msk.bf16.vlgmr.msra.gmra.mrb[20].mxu0 %vm82_vm0, %v790_v4  ;;  %v1370_v4 = vsel %vm858_vm2, %v2352_v1, 0 }
 0x60e   :  { %2592 = vmatpush3.bf16.msra.mxu0 %v860_v20 }
 0x60f   :  { %2732 = vmatprep.subr.msk.bf16.mxu0 %vm858_vm2, %v457_v23 }
 0x654   :  { %v1258_v6 = vpop.xlane.xlu0 %1257 }
 0x655   :  { %v1268_v7 = vsub.f32 %v1242_v35, %v1258_v6  ;;  %v918_v35 = vsel %vm858_vm2, %v457_v23, 0  ;;  %v2760_v6 = vld [vmem:[%s3363_s2 + $0x70] sm:$0xff]  }
 0x656   :  { %v1261_v8 = vpop.xlane.xlu1 %1260 }
 0x657   :  { %v1272_v10 = vmul.f32 1.442695, %v1268_v7  ;;  %v1269_v11 = vsub.f32 %v1245_v43, %v1261_v8  ;;  %v2762_v7 = vld [vmem:[%s3363_s2 + $0x30] sm:$0xff]   ;;  %v2763_v8 = vld [vmem:[%s3363_s2 + $0x38] sm:$0xff]  }
 0x658   :  { %v1264_v12 = vpop.xlane.xlu0 %1263  ;;  %2649 = vmatprep.subr.bf16.mxu1 %v2762_v7 }
 0x659   :  { %2804 = vpow2.f32 %v1272_v10  ;;  %v1274_v13 = vmul.f32 1.442695, %v1269_v11  ;;  %v1270_v14 = vsub.f32 %v1250_v34, %v1264_v12  ;;  %2650 = vmatpush3.bf16.msra.mxu1 %v2762_v7 }
 0x65a   :  { %v1267_v15 = vpop.xlane.xlu1 %1266  ;;  %2651 = vmatprep.subr.bf16.mxu1 %v2763_v8 }
 0x65b   :  { %2806 = vpow2.f32 %v1274_v13  ;;  %v1276_v16 = vmul.f32 1.442695, %v1270_v14  ;;  %v1271_v17 = vsub.f32 %v1253_v41, %v1267_v15 }
 0x65d   :  { %2808 = vpow2.f32 %v1276_v16  ;;  %v1278_v18 = vmul.f32 1.442695, %v1271_v17  ;;  %2652 = vmatpush3.bf16.msra.mxu1 %v2763_v8  ;;  %v2761_v16 = vld [vmem:[%s3363_s2 + $0x78] sm:$0xff]  }
 0x65f   :  { %2810 = vpow2.f32 %v1278_v18  ;;  %v2360_v18 = vld [vmem:[%s3364_s3 + $0x3] ss:$0 sm:$0xff] }
 0x660   :  { %2654 = vmatmul.mubr.msk.bf16.vlgmr.msra.gmra.mrb[28].mxu1 %vm82_vm0, %v2988_v9 }
 0x661   :  { %2669 = vmatprep.mubr.msk.bf16.mxu1 %vm82_vm0, %v2973_v5 }
 0x663   :  { %v2805_v21 = vpop.eup %2804 }
 0x664   :  { %v1280_v24 = vsel %vm82_vm0, %v2805_v21, 0.0 }
 0x665   :  { %v2807_v26 = vpop.eup %2806  ;;  %1281 = vadd.xlane.f32.xlu0 %v1280_v24 }
 0x666   :  { %v1283_v19 = vsel %vm82_vm0, %v2807_v26, 0.0 }
 0x667   :  { %v2809_v27 = vpop.eup %2808  ;;  %1284 = vadd.xlane.f32.xlu1 %v1283_v19 }
 0x668   :  { %v1286_v28 = vsel %vm82_vm0, %v2809_v27, 0.0 }
 0x669   :  { %v2811_v22 = vpop.eup %2810  ;;  %1287 = vadd.xlane.f32.xlu0 %v1286_v28 }
 0x66a   :  { %v1289_v25 = vsel %vm82_vm0, %v2811_v22, 0.0 }
 0x66b   :  { %1290 = vadd.xlane.f32.xlu1 %v1289_v25  ;;  %v2370_v25 = vld [vmem:[%s3364_s3 + $0x7] ss:$0 sm:$0xff] }
 0x6e0   :  { %v2589_v29 = vpop.f32.mrb[20].mxu0 }
 0x6e1   :  { %v833_v30 = vpop.f32.mrb[21].mxu0 }
 0x6e2   :  { %v2590_v31 = vpop.f32.mrb[22].mxu0 }
 0x6e3   :  { %v849_v32 = vpack.c.bf16 %v2590_v31, %v2589_v29  ;;  %v836_v33 = vpop.f32.mrb[23].mxu0 }
 0x6e4   :  { %v848_v34 = vpack.c.bf16 %v836_v33, %v833_v30 }
 0x6e6   :  { %2593 = vmatprep.mubr.msk.bf16.mxu0 %vm290_vm1, %v848_v34 }
 0x6e7   :  { %2594 = vmatmul.mubr.msk.bf16.vlgmr.msra.gmra.mrb[24].mxu0 %vm290_vm1, %v849_v32 }
 0x6e8   :  { %2598 = vmatpush3.bf16.msra.mxu0 %v918_v35  ;;  %2599 = vmatprep.mubr.msk.bf16.mxu0 %vm290_vm1, %v455_v62 }
 0x6e9   :  { %2619 = vmatprep.subr.bf16.mxu0 %v2758_v38 }
 0x6f2   :  { %v1282_v41 = vpop.xlane.xlu0 %1281 }
 0x6f3   :  { %2812 = vrcp.f32 %v1282_v41  ;;  %2600 = vmatmul.mubr.msk.bf16.vlgmr.msra.gmra.mrb[24].mxu0 %vm290_vm1, %v456_v60 }
 0x6f4   :  { %v1285_v43 = vpop.xlane.xlu1 %1284  ;;  %2620 = vmatpush3.bf16.msra.mxu0 %v2758_v38  ;;  %2623 = vmatprep.mubr.msk.bf16.mxu0 %vm82_vm0, %v2973_v5 }
 0x6f5   :  { %2814 = vrcp.f32 %v1285_v43  ;;  %2621 = vmatprep.subr.bf16.mxu0 %v2759_v40 }
 0x6f6   :  { %v1288_v59 = vpop.xlane.xlu0 %1287 }
 0x6f8   :  { %2622 = vmatpush3.bf16.msra.mxu0 %v2759_v40  ;;  %v1291_v57 = vpop.xlane.xlu1 %1290 }
 0x6f9   :  { %2816 = vrcp.f32 %v1291_v57 }
 0x6fa   :  { %2818 = vrcp.f32 %v1288_v59 }
 0x6fb   :  { %2624 = vmatmul.mubr.msk.bf16.vlgmr.msra.gmra.mrb[28].mxu0 %vm82_vm0, %v2988_v9 }
 0x6fd   :  { %v2813_v58 = vpop.eup %2812 }
 0x6fe   :  { %v1296_v62 = vmul.f32 %v2813_v58, %v2805_v21  ;;  %v2764_v58 = vld [vmem:[%s3363_s2 + $0xb0] sm:$0xff]  }
 0x6ff   :  { %v2815_v61 = vpop.eup %2814  ;;  %2665 = vmatprep.subr.bf16.mxu1 %v2764_v58 }
 0x700   :  { %v1297_v44 = vmul.f32 %v2815_v61, %v2807_v26  ;;  %v2765_v61 = vld [vmem:[%s3363_s2 + $0xb8] sm:$0xff]   ;;  %2666 = vmatpush3.bf16.msra.mxu1 %v2764_v58 }
 0x701   :  { %2667 = vmatprep.subr.bf16.mxu1 %v2765_v61 }
 0x702   :  { %v1300_v45 = vpack.c.bf16 %v1297_v44, %v1296_v62 }
 0x703   :  { %v2817_v56 = vpop.eup %2816 }
 0x704   :  { %2639 = vmatprep.mubr.msk.bf16.mxu0 %vm82_vm0, %v1300_v45  ;;  %v2819_v63 = vpop.eup %2818  ;;  %v1299_v0 = vmul.f32 %v2817_v56, %v2811_v22  ;;  %2668 = vmatpush3.bf16.msra.mxu1 %v2765_v61 }
 0x705   :  { %v1298_v2 = vmul.f32 %v2819_v63, %v2809_v27 }
 0x707   :  { %v1301_v3 = vpack.c.bf16 %v1299_v0, %v1298_v2  ;;  %2670 = vmatmul.mubr.msk.bf16.vlgmr.msra.gmra.mrb[32].mxu1 %vm82_vm0, %v2988_v9 }
 0x733   :  { %v2655_v17 = vpop.f32.mrb[28].mxu1 }
 0x734   :  { %v1493_v20 = vadd.f32 %v2655_v17, %v2360_v18  ;;  %v1484_v21 = vpop.f32.mrb[29].mxu1 }
 0x735   :  { %v1485_v24 = vadd.f32 %v2360_v18, %v1484_v21  ;;  %v2656_v26 = vpop.f32.mrb[30].mxu1 }
 0x736   :  { %v1496_v19 = vadd.f32 %v2656_v26, %v2360_v18  ;;  %v1487_v27 = vpop.f32.mrb[31].mxu1  ;;  %v2389_v26 = vld [vmem:[%s3365_s4 + $0xc] sm:$0xf] }
 0x737   :  { %v1488_v23 = vadd.f32 %v2360_v18, %v1487_v27 }
 0x738   :  { %v1648_v28 = vpack.c.bf16 %v1496_v19, %v1493_v20 }
 0x739   :  { %v1647_v22 = vpack.c.bf16 %v1488_v23, %v1485_v24 }
 0x7ce   :  { %v2625_v60 = vpop.f32.mrb[28].mxu0 }
 0x7cf   :  { %v1176_v47 = vpop.f32.mrb[29].mxu0  ;;  %v1185_v49 = vadd.f32 %v2625_v60, %v2343_v46 }
 0x7d0   :  { %v2626_v48 = vpop.f32.mrb[30].mxu0  ;;  %v1177_v52 = vadd.f32 %v2343_v46, %v1176_v47 }
 0x7d1   :  { %v1188_v50 = vadd.f32 %v2626_v48, %v2343_v46  ;;  %v1179_v51 = vpop.f32.mrb[31].mxu0 }
 0x7d2   :  { %v1180_v53 = vadd.f32 %v2343_v46, %v1179_v51 }
 0x7d3   :  { %v1303_v54 = vpack.c.bf16 %v1188_v50, %v1185_v49 }
 0x7d4   :  { %v1302_v55 = vpack.c.bf16 %v1180_v53, %v1177_v52 }
 0x7d6   :  { %2635 = vmatprep.subr.bf16.mxu0 %v1302_v55 }
 0x7d7   :  { %2636 = vmatpush3.bf16.msra.mxu0 %v1302_v55 }
 0x7d8   :  { %2637 = vmatprep.subr.bf16.mxu0 %v1303_v54 }
 0x7db   :  { %2638 = vmatpush3.bf16.msra.mxu0 %v1303_v54 }
 0x7dc   :  { %2735 = vmatprep.subr.msk.bf16.mxu0 %vm858_vm2, %v2352_v1 }
 0x7de   :  { %2640 = vmatmul.mubr.msk.bf16.vlgmr.msra.gmra.mrb[32].mxu0 %vm82_vm0, %v1301_v3 }
 0x7df   :  { %2644 = vmatpush3.bf16.msra.mxu0 %v1370_v4 }
 0x7e0   :  { %2657 = vmatprep.subr.bf16.mxu0 %v2760_v6 }
 0x8b1   :  { %v2641_v10 = vpop.f32.mrb[32].mxu0 }
 0x8b2   :  { %v1344_v11 = vpop.f32.mrb[33].mxu0 }
 0x8b3   :  { %v2642_v12 = vpop.f32.mrb[34].mxu0 }
 0x8b4   :  { %v1360_v13 = vpack.c.bf16 %v2642_v12, %v2641_v10  ;;  %v1347_v14 = vpop.f32.mrb[35].mxu0 }
 0x8b5   :  { %v1359_v15 = vpack.c.bf16 %v1347_v14, %v1344_v11 }
 0x8b7   :  { %2645 = vmatprep.mubr.msk.bf16.mxu0 %vm290_vm1, %v1359_v15 }
 0x8b8   :  { %2646 = vmatmul.mubr.msk.bf16.vlgmr.msra.gmra.mrb[24].mxu0 %vm290_vm1, %v1360_v13 }
 0x8b9   :  { %2658 = vmatpush3.bf16.msra.mxu0 %v2760_v6  ;;  %2661 = vmatprep.mubr.msk.bf16.mxu0 %vm82_vm0, %v2973_v5 }
 0x8ba   :  { %2659 = vmatprep.subr.bf16.mxu0 %v2761_v16 }
 0x8bd   :  { %2660 = vmatpush3.bf16.msra.mxu0 %v2761_v16 }
 0x8c0   :  { %2662 = vmatmul.mubr.msk.bf16.vlgmr.msra.gmra.mrb[36].mxu0 %vm82_vm0, %v2988_v9 }
 0x8c1   :  { %2677 = vmatprep.mubr.msk.bf16.mxu0 %vm290_vm1, %v1647_v22 }
 0x993   :  { %v2663_v5 = vpop.f32.mrb[36].mxu0 }
 0x994   :  { %v1558_v29 = vpop.f32.mrb[37].mxu0  ;;  %v1567_v31 = vadd.f32 %v2663_v5, %v2370_v25 }
 0x995   :  { %v2664_v30 = vpop.f32.mrb[38].mxu0  ;;  %v1559_v34 = vadd.f32 %v2370_v25, %v1558_v29 }
 0x996   :  { %v1570_v32 = vadd.f32 %v2664_v30, %v2370_v25  ;;  %v1561_v33 = vpop.f32.mrb[39].mxu0 }
 0x997   :  { %v1562_v35 = vadd.f32 %v2370_v25, %v1561_v33 }
 0x998   :  { %v1650_v38 = vpack.c.bf16 %v1570_v32, %v1567_v31 }
 0x999   :  { %v1649_v40 = vpack.c.bf16 %v1562_v35, %v1559_v34 }
 0x99a   :  { %v1661_v43 = vsel %vm290_vm1, %v1650_v38, 0 }
 0x99b   :  { %2736 = vmatprep.subr.msk.bf16.mxu0 %vm290_vm1, %v1649_v40  ;;  %v1658_v41 = vsel %vm290_vm1, %v1649_v40, 0 }
 0x99c   :  { %2674 = vmatpush3.bf16.xpose.msra.mxu0 %v1658_v41 }
 0x99d   :  { %2737 = vmatprep.subr.msk.bf16.mxu0 %vm290_vm1, %v1650_v38  ;;  %v1826_v38 = vsel %vm858_vm2, %v2389_v26, 0 }
 0x9a4   :  { %2676 = vmatpush3.bf16.xpose.msra.mxu0 %v1661_v43 }
 0x9a5   :  { %2738 = vmatprep.subr.msk.bf16.mxu0 %vm858_vm2, %v2389_v26  ;;  %v2767_v26 = vld [vmem:[%s3369_s8 + $0x8] sm:$0xff]  }
 0x9ab   :  { %2678 = vmatmul.mubr.msk.bf16.vlgmr.msra.gmra.mrb[40].mxu0 %vm290_vm1, %v1648_v28 }
 0x9ac   :  { %2690 = vmatpush3.bf16.msra.mxu0 %v1826_v38  ;;  %v2393_v38 = vld [vmem:[%s3367_s6] ss:$0 sm:$0xff] }
 0xa7e   :  { %v2679_v62 = vpop.f32.mrb[40].mxu0 }
 0xa7f   :  { %v1697_v44 = vpop.f32.mrb[41].mxu0  ;;  %v1706_v60 = vadd.f32 %v2679_v62, %v3021_v36  ;;  %v2380_v36 = vld [vmem:[%s3364_s3 + $0xb] ss:$0 sm:$0xff] }
 0xa80   :  { %v1698_v45 = vadd.f32 %v1697_v44, %v3026_v37  ;;  %v2680_v57 = vpop.f32.mrb[42].mxu0  ;;  %v2671_v37 = vpop.f32.mrb[32].mxu1  ;;  %v2392_v44 = vld [vmem:[%s3366_s5] ss:$0 sm:$0xff]  ;;  %s2880_s5 = smov [#allocation2]  }
 0xa81   :  { %v1700_v59 = vpop.f32.mrb[43].mxu0  ;;  %v1709_v48 = vadd.f32 %v2680_v57, %v3031_v39  ;;  %v1718_v9 = vsel %vm82_vm0, %v1706_v60, -inf  ;;  %v1632_v51 = vpop.f32.mrb[33].mxu1 }
 0xa82   :  { %v1701_v46 = vadd.f32 %v1700_v59, %v3037_v42  ;;  %v1712_v47 = vsel %vm82_vm0, %v1698_v45, -inf  ;;  %v1641_v42 = vadd.f32 %v2671_v37, %v2380_v36  ;;  %v2672_v52 = vpop.f32.mrb[34].mxu1  ;;  %v1633_v18 = vadd.f32 %v2380_v36, %v1632_v51  ;;  %v2854_v51 = vld [vmem:[%s3361_s0 + $0x10] sm:$0xff] }
 0xa83   :  { %1713 = vmax.xlane.f32.xlu0 %v1712_v47  ;;  %v1721_v50 = vsel %vm82_vm0, %v1709_v48, -inf  ;;  %v1644_v53 = vadd.f32 %v2672_v52, %v2380_v36  ;;  %v1635_v20 = vpop.f32.mrb[35].mxu1 }
 0xa84   :  { %v1715_v49 = vsel %vm82_vm0, %v1701_v46, -inf  ;;  %v1636_v21 = vadd.f32 %v2380_v36, %v1635_v20  ;;  %v2853_v36 = vld [vmem:[%s3361_s0 + $0x8] sm:$0xff] }
 0xa85   :  { %1716 = vmax.xlane.f32.xlu1 %v1715_v49  ;;  %v1759_v54 = vpack.c.bf16 %v1644_v53, %v1641_v42 }
 0xa86   :  { %v1758_v24 = vpack.c.bf16 %v1636_v21, %v1633_v18 }
 0xa87   :  { %1719 = vmax.xlane.f32.xlu0 %v1718_v9  ;;  %v2852_v9 = vld [vmem:[%s3361_s0] sm:$0xff] }
 0xa88   :  { %2681 = vmatprep.subr.bf16.mxu1 %v1758_v24 }
 0xa89   :  { %1722 = vmax.xlane.f32.xlu1 %v1721_v50  ;;  %2682 = vmatpush3.bf16.msra.mxu1 %v1758_v24  ;;  %v2766_v24 = vld [vmem:[%s3369_s8] sm:$0xff]  }
 0xa8a   :  { %2683 = vmatprep.subr.bf16.mxu1 %v1759_v54 }
 0xa8d   :  { %2684 = vmatpush3.bf16.msra.mxu1 %v1759_v54  ;;  %v2855_v54 = vld [vmem:[%s3361_s0 + $0x18] sm:$0xff] }
 0xa8e   :  { %2695 = vmatprep.subr.bf16.mxu1 %v2766_v24 }
 0xb10   :  { %v1714_v39 = vpop.xlane.xlu0 %1713 }
 0xb11   :  { %v1724_v55 = vsub.f32 %v1698_v45, %v1714_v39 }
 0xb12   :  { %v1717_v56 = vpop.xlane.xlu1 %1716 }
 0xb13   :  { %v1728_v63 = vmul.f32 1.442695, %v1724_v55  ;;  %v1725_v0 = vsub.f32 %v1701_v46, %v1717_v56 }
 0xb14   :  { %v1720_v1 = vpop.xlane.xlu0 %1719 }
 0xb15   :  { %2820 = vpow2.f32 %v1728_v63  ;;  %v1730_v2 = vmul.f32 1.442695, %v1725_v0  ;;  %v1726_v3 = vsub.f32 %v1706_v60, %v1720_v1 }
 0xb16   :  { %v1723_v4 = vpop.xlane.xlu1 %1722 }
 0xb17   :  { %2822 = vpow2.f32 %v1730_v2  ;;  %v1732_v6 = vmul.f32 1.442695, %v1726_v3  ;;  %v1727_v7 = vsub.f32 %v1709_v48, %v1723_v4 }
 0xb19   :  { %2824 = vpow2.f32 %v1732_v6  ;;  %v1734_v8 = vmul.f32 1.442695, %v1727_v7 }
 0xb1b   :  { %2826 = vpow2.f32 %v1734_v8 }
 0xb1f   :  { %v2821_v10 = vpop.eup %2820 }
 0xb20   :  { %v1736_v11 = vsel %vm82_vm0, %v2821_v10, 0.0 }
 0xb21   :  { %v2823_v12 = vpop.eup %2822  ;;  %1737 = vadd.xlane.f32.xlu0 %v1736_v11 }
 0xb22   :  { %v1739_v13 = vsel %vm82_vm0, %v2823_v12, 0.0 }
 0xb23   :  { %v2825_v14 = vpop.eup %2824  ;;  %1740 = vadd.xlane.f32.xlu1 %v1739_v13 }
 0xb24   :  { %v1742_v15 = vsel %vm82_vm0, %v2825_v14, 0.0 }
 0xb25   :  { %v2827_v16 = vpop.eup %2826  ;;  %1743 = vadd.xlane.f32.xlu0 %v1742_v15 }
 0xb26   :  { %v1745_v17 = vsel %vm82_vm0, %v2827_v16, 0.0 }
 0xb27   :  { %1746 = vadd.xlane.f32.xlu1 %v1745_v17 }
 0xbae   :  { %v1738_v19 = vpop.xlane.xlu0 %1737 }
 0xbaf   :  { %2828 = vrcp.f32 %v1738_v19  ;;  %v2768_v19 = vld [vmem:[%s3371_s10] sm:$0xff]  }
 0xbb0   :  { %v1741_v27 = vpop.xlane.xlu1 %1740 }
 0xbb1   :  { %2830 = vrcp.f32 %v1741_v27 }
 0xbb2   :  { %v1744_v23 = vpop.xlane.xlu0 %1743 }
 0xbb3   :  { %2832 = vrcp.f32 %v1744_v23 }
 0xbb4   :  { %v1747_v28 = vpop.xlane.xlu1 %1746 }
 0xbb5   :  { %2834 = vrcp.f32 %v1747_v28 }
 0xbb9   :  { %v2829_v22 = vpop.eup %2828 }
 0xbba   :  { %v1752_v25 = vmul.f32 %v2829_v22, %v2821_v10 }
 0xbbb   :  { %v2831_v5 = vpop.eup %2830 }
 0xbbc   :  { %v1753_v29 = vmul.f32 %v2831_v5, %v2823_v12 }
 0xbbd   :  { %v2833_v30 = vpop.eup %2832 }
 0xbbe   :  { %v1756_v31 = vpack.c.bf16 %v1753_v29, %v1752_v25  ;;  %v1754_v33 = vmul.f32 %v2833_v30, %v2825_v14 }
 0xbbf   :  { %v2835_v32 = vpop.eup %2834 }
 0xbc0   :  { %v1755_v34 = vmul.f32 %v2835_v32, %v2827_v16  ;;  %2685 = vmatprep.mubr.msk.bf16.mxu1 %vm82_vm0, %v1756_v31 }
 0xbc2   :  { %v1757_v35 = vpack.c.bf16 %v1755_v34, %v1754_v33 }
 0xbc4   :  { %2686 = vmatmul.mubr.msk.bf16.vlgmr.msra.gmra.mrb[36].mxu1 %vm82_vm0, %v1757_v35 }
 0xbc5   :  { %2696 = vmatpush3.bf16.msra.mxu1 %v2766_v24 }
 0xbc6   :  { %2697 = vmatprep.subr.bf16.mxu1 %v2767_v26 }
 0xbc9   :  { %2698 = vmatpush3.bf16.msra.mxu1 %v2767_v26 }
 0xbca   :  { %2703 = vmatprep.subr.bf16.mxu1 %v2768_v19 }
 0xc97   :  { %v2687_v40 = vpop.f32.mrb[36].mxu1 }
 0xc98   :  { %v1800_v41 = vpop.f32.mrb[37].mxu1 }
 0xc99   :  { %v2688_v43 = vpop.f32.mrb[38].mxu1 }
 0xc9a   :  { %v1816_v58 = vpack.c.bf16 %v2688_v43, %v2687_v40  ;;  %v1803_v61 = vpop.f32.mrb[39].mxu1 }
 0xc9b   :  { %v1815_v62 = vpack.c.bf16 %v1803_v61, %v1800_v41 }
 0xc9d   :  { %2691 = vmatprep.mubr.msk.bf16.mxu0 %vm290_vm1, %v1815_v62  ;;  %v2394_v62 = vld [vmem:[%s3368_s7] ss:$0 sm:$0xff] }
 0xc9e   :  { %2692 = vmatmul.mubr.msk.bf16.vlgmr.msra.gmra.mrb[24].mxu0 %vm290_vm1, %v1816_v58 }
 0xd71   :  { %v2693_v45 = vpop.f32.mrb[24].mxu0 }
 0xd72   :  { %v1862_v57 = vpop.f32.mrb[25].mxu0  ;;  %v1890_v59 = vadd.f32 %v2693_v45, %v2392_v44 }
 0xd73   :  { %v1888_v60 = vadd.f32 %v2392_v44, %v1862_v57  ;;  %v2694_v46 = vpop.f32.mrb[26].mxu0 }
 0xd74   :  { %v1865_v47 = vpop.f32.mrb[27].mxu0  ;;  %v1891_v48 = vadd.f32 %v2694_v46, %v2392_v44  ;;  %v1894_v52 = vadd.f32 %v2854_v51, %v1890_v59  ;;  %v2771_v51 = vld [vmem:[%s3371_s10 + $0x18] sm:$0xff]  }
 0xd75   :  { %v1889_v49 = vadd.f32 %v2392_v44, %v1865_v47  ;;  %v1892_v50 = vadd.f32 %v2852_v9, %v1888_v60 }
 0xd76   :  { %v1895_v39 = vadd.f32 %v2855_v54, %v1891_v48  ;;  %v1904_v55 = vsel %vm82_vm0, %v1894_v52, 0.0 }
 0xd77   :  { %v1898_v37 = vsel %vm82_vm0, %v1892_v50, 0.0  ;;  %v1893_v42 = vadd.f32 %v2853_v36, %v1889_v49  ;;  %v2769_v36 = vld [vmem:[%s3371_s10 + $0x8] sm:$0xff]  }
 0xd78   :  { %1899 = vadd.xlane.f32.xlu0 %v1898_v37  ;;  %v1907_v56 = vsel %vm82_vm0, %v1895_v39, 0.0 }
 0xd79   :  { %v1901_v53 = vsel %vm82_vm0, %v1893_v42, 0.0 }
 0xd7a   :  { %1902 = vadd.xlane.f32.xlu1 %v1901_v53 }
 0xd7c   :  { %1905 = vadd.xlane.f32.xlu0 %v1904_v55 }
 0xd7e   :  { %1908 = vadd.xlane.f32.xlu1 %v1907_v56 }
 0xe05   :  { %v1900_v63 = vpop.xlane.xlu0 %1899 }
 0xe06   :  { %v1911_v0 = vmul.f32 0.03125, %v1900_v63 }
 0xe07   :  { %v1903_v1 = vpop.xlane.xlu1 %1902 }
 0xe08   :  { %v1915_v2 = vsub.f32 %v1892_v50, %v1911_v0  ;;  %v1912_v3 = vmul.f32 0.03125, %v1903_v1 }
 0xe09   :  { %v1906_v4 = vpop.xlane.xlu0 %1905 }
 0xe0a   :  { %v1916_v6 = vsub.f32 %v1893_v42, %v1912_v3  ;;  %v1913_v7 = vmul.f32 0.03125, %v1906_v4  ;;  %v1919_v8 = vmul.f32 %v1915_v2, %v1915_v2  ;;  %v2770_v42 = vld [vmem:[%s3371_s10 + $0x10] sm:$0xff]  }
 0xe0b   :  { %v1909_v10 = vpop.xlane.xlu1 %1908 }
 0xe0c   :  { %v1917_v11 = vsub.f32 %v1894_v52, %v1913_v7  ;;  %v1914_v12 = vmul.f32 0.03125, %v1909_v10  ;;  %v1923_v13 = vsel %vm82_vm0, %v1919_v8, 0.0  ;;  %v1920_v14 = vmul.f32 %v1916_v6, %v1916_v6  ;;  %v2395_v52 = vld [vmem:[%s3370_s9] ss:$0 sm:$0xff] }
 0xe0d   :  { %1924 = vadd.xlane.f32.xlu0 %v1923_v13  ;;  %v2400_v10 = vld [vmem:[%s3372_s11] ss:$0 sm:$0xff] }
 0xe0e   :  { %v1918_v15 = vsub.f32 %v1895_v39, %v1914_v12  ;;  %v1926_v16 = vsel %vm82_vm0, %v1920_v14, 0.0  ;;  %v1921_v17 = vmul.f32 %v1917_v11, %v1917_v11 }
 0xe0f   :  { %1927 = vadd.xlane.f32.xlu1 %v1926_v16 }
 0xe10   :  { %v1929_v18 = vsel %vm82_vm0, %v1921_v17, 0.0  ;;  %v1922_v20 = vmul.f32 %v1918_v15, %v1918_v15 }
 0xe11   :  { %1930 = vadd.xlane.f32.xlu0 %v1929_v18 }
 0xe12   :  { %v1932_v21 = vsel %vm82_vm0, %v1922_v20, 0.0 }
 0xe13   :  { %1933 = vadd.xlane.f32.xlu1 %v1932_v21 }
 0xe9a   :  { %v1925_v27 = vpop.xlane.xlu0 %1924 }
 0xe9b   :  { %v1935_v23 = vmul.f32 0.03125, %v1925_v27 }
 0xe9c   :  { %v1928_v28 = vpop.xlane.xlu1 %1927 }
 0xe9d   :  { %v1939_v22 = vadd.f32 1e-05, %v1935_v23  ;;  %v1936_v5 = vmul.f32 0.03125, %v1928_v28 }
 0xe9e   :  { %v1931_v25 = vpop.xlane.xlu0 %1930 }
 0xe9f   :  { %2836 = vrsqrt.f32 %v1939_v22  ;;  %v1940_v29 = vadd.f32 1e-05, %v1936_v5  ;;  %v1937_v30 = vmul.f32 0.03125, %v1931_v25 }
 0xea0   :  { %v1934_v31 = vpop.xlane.xlu1 %1933 }
 0xea1   :  { %2838 = vrsqrt.f32 %v1940_v29  ;;  %v1941_v32 = vadd.f32 1e-05, %v1937_v30  ;;  %v1938_v33 = vmul.f32 0.03125, %v1934_v31 }
 0xea3   :  { %2840 = vrsqrt.f32 %v1941_v32  ;;  %v1942_v34 = vadd.f32 1e-05, %v1938_v33 }
 0xea5   :  { %2842 = vrsqrt.f32 %v1942_v34 }
 0xea9   :  { %v2837_v35 = vpop.eup %2836 }
 0xeaa   :  { %v1947_v40 = vmul.f32 %v2837_v35, %v1915_v2 }
 0xeab   :  { %v2839_v41 = vpop.eup %2838 }
 0xeac   :  { %v1948_v43 = vmul.f32 %v2839_v41, %v1916_v6  ;;  %v1957_v58 = vmul.f32 %v2393_v38, %v1947_v40 }
 0xead   :  { %v2841_v61 = vpop.eup %2840 }
 0xeae   :  { %v1949_v44 = vmul.f32 %v2841_v61, %v1917_v11  ;;  %v1958_v45 = vmul.f32 %v2393_v38, %v1948_v43  ;;  %v1967_v46 = vadd.f32 %v2394_v62, %v1957_v58 }
 0xeaf   :  { %v2843_v57 = vpop.eup %2842 }
 0xeb0   :  { %v1959_v59 = vmul.f32 %v2393_v38, %v1949_v44  ;;  %v1950_v60 = vmul.f32 %v2843_v57, %v1918_v15  ;;  %v1968_v47 = vadd.f32 %v2394_v62, %v1958_v45 }
 0xeb2   :  { %v1960_v48 = vmul.f32 %v2393_v38, %v1950_v60  ;;  %v1971_v49 = vpack.c.bf16 %v1968_v47, %v1967_v46  ;;  %v1969_v9 = vadd.f32 %v2394_v62, %v1959_v59 }
 0xeb4   :  { %2699 = vmatprep.mubr.msk.bf16.mxu1 %vm82_vm0, %v1971_v49  ;;  %v1970_v50 = vadd.f32 %v2394_v62, %v1960_v48 }
 0xeb6   :  { %v1972_v37 = vpack.c.bf16 %v1970_v50, %v1969_v9 }
 0xeb8   :  { %2700 = vmatmul.mubr.msk.bf16.vlgmr.msra.gmra.mrb[40].mxu1 %vm82_vm0, %v1972_v37 }
 0xeb9   :  { %2704 = vmatpush3.bf16.msra.mxu1 %v2768_v19 }
 0xeba   :  { %2705 = vmatprep.subr.bf16.mxu1 %v2769_v36 }
 0xebd   :  { %2706 = vmatpush3.bf16.msra.mxu1 %v2769_v36 }
 0xebe   :  { %2707 = vmatprep.subr.bf16.mxu1 %v2770_v42 }
 0xec1   :  { %2708 = vmatpush3.bf16.msra.mxu1 %v2770_v42 }
 0xec2   :  { %2709 = vmatprep.subr.bf16.mxu1 %v2771_v51 }
 0xec5   :  { %2710 = vmatpush3.bf16.msra.mxu1 %v2771_v51 }
 0xf8b   :  { %v2701_v53 = vpop.f32.mrb[40].mxu1 }
 0xf8c   :  { %v2045_v54 = vadd.f32 %v2701_v53, %v2395_v52  ;;  %v2036_v39 = vpop.f32.mrb[41].mxu1  ;;  %v2407_v53 = vld [vmem:[%s3373_s12] ss:$0 sm:$0xff]  ;;  %s2239_s12 = sshll.u32 %s2880_s5, 4  ;;  %s2240_s12 = int_to_ptr.vmem [resolvable:$true] %s2239_s12 }
 0xf8d   :  { %v2037_v55 = vadd.f32 %v2395_v52, %v2036_v39  ;;  %v2702_v56 = vpop.f32.mrb[42].mxu1  ;;  %p2861_p1 = scmp.lt.s32.totalorder %s2240_s12, %s2240_s12 }
 0xf8e   :  { %v2048_v63 = vadd.f32 %v2702_v56, %v2395_v52  ;;  %v2039_v0 = vpop.f32.mrb[43].mxu1  ;;  %v2053_v2 = vmax.f32 %v2045_v54, 0.0 }
 0xf8f   :  { %v2040_v1 = vadd.f32 %v2395_v52, %v2039_v0  ;;  %v2051_v4 = vmax.f32 %v2037_v55, 0.0  ;;  %v2408_v55 = vld [vmem:[%s3374_s13] ss:$0 sm:$0xff]  ;;  %s2856_s13 = scalar_lea.vmem %s2240_s12, 512 }
 0xf90   :  { %v2054_v3 = vmax.f32 %v2048_v63, 0.0  ;;  %p2857_p0 = scmp.ne.s32.totalorder %s2240_s12, %s2856_s13  ;;  %p2862_p2 = scmp.lt.s32.totalorder %s2856_s13, %s2856_s13 }
 0xf91   :  { %v2052_v6 = vmax.f32 %v2040_v1, 0.0 }
 0xf92   :  { %v2056_v7 = vpack.c.bf16 %v2054_v3, %v2053_v2  ;;  %p2863_p3 = por %p2862_p2, %p2861_p1 }
 0xf93   :  { %v2055_v8 = vpack.c.bf16 %v2052_v6, %v2051_v4 }
 0xf94   :  { %p2864_p4 = pnand %p2863_p3, %p2857_p0 }
 0xf95   :  { %2711 = vmatprep.mubr.msk.bf16.mxu1 %vm2096_vm3, %v2055_v8 }
 0xf96   :  { %2712 = vmatmul.mubr.msk.bf16.vlgmr.msra.gmra.mrb[44].mxu1 %vm2096_vm3, %v2056_v7 }
0x1069   :  { %v2713_v11 = vpop.f32.mrb[44].mxu1 }
0x106a   :  { %v2137_v12 = vpop.f32.mrb[45].mxu1  ;;  %v2146_v13 = vadd.f32 %v2713_v11, %v2400_v10 }
0x106b   :  { %v2138_v14 = vadd.f32 %v2400_v10, %v2137_v12  ;;  %v2714_v15 = vpop.f32.mrb[46].mxu1 }
0x106c   :  { %v2140_v16 = vpop.f32.mrb[47].mxu1  ;;  %v2149_v17 = vadd.f32 %v2714_v15, %v2400_v10  ;;  %v2154_v26 = vadd.f32 %v2146_v13, %v1969_v9 }
0x106d   :  { %v2141_v18 = vadd.f32 %v2400_v10, %v2140_v16  ;;  %v2152_v20 = vadd.f32 %v2138_v14, %v1967_v46 }
0x106e   :  { %v2155_v27 = vadd.f32 %v2149_v17, %v1970_v50  ;;  %v2164_v23 = vsel %vm82_vm0, %v2154_v26, 0.0 }
0x106f   :  { %v2158_v21 = vsel %vm82_vm0, %v2152_v20, 0.0  ;;  %v2153_v24 = vadd.f32 %v2141_v18, %v1968_v47 }
0x1070   :  { %2159 = vadd.xlane.f32.xlu0 %v2158_v21  ;;  %v2167_v28 = vsel %vm82_vm0, %v2155_v27, 0.0 }
0x1071   :  { %v2161_v19 = vsel %vm82_vm0, %v2153_v24, 0.0 }
0x1072   :  { %2162 = vadd.xlane.f32.xlu1 %v2161_v19 }
0x1074   :  { %2165 = vadd.xlane.f32.xlu0 %v2164_v23 }
0x1076   :  { %2168 = vadd.xlane.f32.xlu1 %v2167_v28 }
0x10fd   :  { %v2160_v22 = vpop.xlane.xlu0 %2159 }
0x10fe   :  { %v2170_v5 = vmul.f32 0.03125, %v2160_v22 }
0x10ff   :  { %v2163_v25 = vpop.xlane.xlu1 %2162 }
0x1100   :  { %v2174_v29 = vsub.f32 %v2152_v20, %v2170_v5  ;;  %v2171_v30 = vmul.f32 0.03125, %v2163_v25 }
0x1101   :  { %v2166_v31 = vpop.xlane.xlu0 %2165 }
0x1102   :  { %v2175_v32 = vsub.f32 %v2153_v24, %v2171_v30  ;;  %v2172_v33 = vmul.f32 0.03125, %v2166_v31  ;;  %v2178_v34 = vmul.f32 %v2174_v29, %v2174_v29 }
0x1103   :  { %v2169_v35 = vpop.xlane.xlu1 %2168 }
0x1104   :  { %v2176_v38 = vsub.f32 %v2154_v26, %v2172_v33  ;;  %v2173_v40 = vmul.f32 0.03125, %v2169_v35  ;;  %v2182_v41 = vsel %vm82_vm0, %v2178_v34, 0.0  ;;  %v2179_v43 = vmul.f32 %v2175_v32, %v2175_v32 }
0x1105   :  { %2183 = vadd.xlane.f32.xlu0 %v2182_v41 }
0x1106   :  { %v2177_v58 = vsub.f32 %v2155_v27, %v2173_v40  ;;  %v2185_v61 = vsel %vm82_vm0, %v2179_v43, 0.0  ;;  %v2180_v62 = vmul.f32 %v2176_v38, %v2176_v38 }
0x1107   :  { %2186 = vadd.xlane.f32.xlu1 %v2185_v61 }
0x1108   :  { %v2188_v44 = vsel %vm82_vm0, %v2180_v62, 0.0  ;;  %v2181_v45 = vmul.f32 %v2177_v58, %v2177_v58 }
0x1109   :  { %2189 = vadd.xlane.f32.xlu0 %v2188_v44 }
0x110a   :  { %v2191_v57 = vsel %vm82_vm0, %v2181_v45, 0.0 }
0x110b   :  { %2192 = vadd.xlane.f32.xlu1 %v2191_v57 }
0x1192   :  { %v2184_v59 = vpop.xlane.xlu0 %2183 }
0x1193   :  { %v2194_v60 = vmul.f32 0.03125, %v2184_v59 }
0x1194   :  { %v2187_v46 = vpop.xlane.xlu1 %2186 }
0x1195   :  { %v2198_v47 = vadd.f32 1e-05, %v2194_v60  ;;  %v2195_v48 = vmul.f32 0.03125, %v2187_v46 }
0x1196   :  { %v2190_v49 = vpop.xlane.xlu0 %2189 }
0x1197   :  { %2844 = vrsqrt.f32 %v2198_v47  ;;  %v2199_v9 = vadd.f32 1e-05, %v2195_v48  ;;  %v2196_v50 = vmul.f32 0.03125, %v2190_v49 }
0x1198   :  { %v2193_v37 = vpop.xlane.xlu1 %2192 }
0x1199   :  { %2846 = vrsqrt.f32 %v2199_v9  ;;  %v2200_v36 = vadd.f32 1e-05, %v2196_v50  ;;  %v2197_v42 = vmul.f32 0.03125, %v2193_v37 }
0x119b   :  { %2848 = vrsqrt.f32 %v2200_v36  ;;  %v2201_v51 = vadd.f32 1e-05, %v2197_v42 }
0x119d   :  { %2850 = vrsqrt.f32 %v2201_v51 }
0x11a1   :  { %v2845_v52 = vpop.eup %2844 }
0x11a2   :  { %v2206_v54 = vmul.f32 %v2845_v52, %v2174_v29 }
0x11a3   :  { %v2847_v39 = vpop.eup %2846 }
0x11a4   :  { %v2216_v56 = vmul.f32 %v2407_v53, %v2206_v54  ;;  %v2207_v63 = vmul.f32 %v2847_v39, %v2175_v32 }
0x11a5   :  { %v2849_v0 = vpop.eup %2848 }
0x11a6   :  { %v2226_v1 = vadd.f32 %v2408_v55, %v2216_v56  ;;  %v2217_v2 = vmul.f32 %v2407_v53, %v2207_v63  ;;  %v2208_v3 = vmul.f32 %v2849_v0, %v2176_v38 }
0x11a7   :  { %v2851_v4 = vpop.eup %2850 }
0x11a8   :  { %2230 = vst.msk [vmem:[#allocation2] sm:$0xff] %vm82_vm0, %v2226_v1  ;;  %v2227_v6 = vadd.f32 %v2408_v55, %v2217_v2  ;;  %v2218_v7 = vmul.f32 %v2407_v53, %v2208_v3  ;;  %v2209_v8 = vmul.f32 %v2851_v4, %v2177_v58 }
0x11aa   :  { %2231 = vst.msk [vmem:[#allocation2 + $0x8] sm:$0xff] %vm82_vm0, %v2227_v6  ;;  %v2228_v10 = vadd.f32 %v2408_v55, %v2218_v7  ;;  %v2219_v11 = vmul.f32 %v2407_v53, %v2209_v8 }
0x11ac   :  { %2232 = vst.msk [vmem:[#allocation2 + $0x10] sm:$0xff] %vm82_vm0, %v2228_v10  ;;  %v2229_v12 = vadd.f32 %v2408_v55, %v2219_v11 }
0x11ae   :  { %2233 = vst.msk [vmem:[#allocation2 + $0x18] sm:$0xff] %vm82_vm0, %v2229_v12 }
0x11af   :  { %2867 = shalt.err (!%p2864_p4)
}
0x11b0   :  { %s2868_s29 = scalar_lea.hbm %s3375_s14, 512 }
0x11b1   :  { %p2869_p5 = scmp.ne.s32.totalorder %s3375_s14, %s2868_s29  ;;  %p2872_p6 = scmp.lt.u32.totalorder %s2868_s29, %s3375_s14 }
0x11b3   :  { %p2874_p7 = pnand %p2872_p6, %p2869_p5 }
0x11b5   :  { %2877 = shalt.err (!%p2874_p7)
}
0x11b6   :  { %s2881_s17 = smov 128   ;;  %s2882_s18 = smov 8  }
0x11b7   :  { %2245 = dma.vmem_to_hbm [thread:$0]  %s2240_s12, 512, %s3375_s14, [#allocation3], %s2881_s17, %s2881_s17, %s2882_s18  }
0x11b8   :  { %2878 = dma.done.wait [#allocation3], 512  }
0x11b9   :  { %2879 = vsyncadd [#allocation3], 4294966784 }
0x11ba   :  { %2249 = vsyncpa [#allocation3], 1 }

</bundles_post_ra>
